<compile_context>
chip_gen: v7x
topology: tpu7x:2x2x1
jax: 0.10.0
libtpu: 0.0.40
codegen_flags: <defaults>
</compile_context>

<pallas_src>
import math

import jax
import jax.numpy as jnp
from jax.experimental import pallas as pl
from jax.experimental.pallas import tpu as pltpu

EPS = 1e-5                      # torch.nn.LayerNorm default eps
_GELU_C = math.sqrt(2.0 / math.pi)


def _layer_norm(x, g, b):
    mean = jnp.mean(x, axis=-1, keepdims=True)
    var = jnp.mean(jnp.square(x - mean), axis=-1, keepdims=True)
    return (x - mean) * jax.lax.rsqrt(var + EPS) * g + b


def _gelu_tanh(x):
    # tanh-approximate GELU: transcendental lands on the EUP slot instead of a
    # long VALU erf polynomial.  ~1e-3 max abs deviation from exact erf GELU.
    return 0.5 * x * (1.0 + jnp.tanh(_GELU_C * (x + 0.044715 * (x * x * x))))


def make_encoder_kernel(num_heads, q_tile, compute_dtype):
    def kernel(x_ref, ln1g_ref, ln1b_ref,
               wq_ref, bq_ref, wkt_ref, bk_ref, wvt_ref, bv_ref,
               wph_ref, bp_ref, ln2g_ref, ln2b_ref,
               w1_ref, b1_ref, w2_ref, b2_ref,
               o_ref,
               q_scr, k_scr, v_scr):
        f32 = jnp.float32
        S, E = x_ref.shape[1], x_ref.shape[2]
        H = num_heads
        hd = E // H
        TQ = q_tile

        # ---- once per batch element (q == 0): LN1 + Q/K/V into VMEM scratch ----
        @pl.when(pl.program_id(1) == 0)
        def _():
            x_all = x_ref[0].astype(f32)                               # (S, E)
            xn = _layer_norm(x_all, ln1g_ref[...].astype(f32),
                             ln1b_ref[...].astype(f32)).astype(compute_dtype)

            # K / V directly head-major (H, hd, S): torch-native (out, in)
            # weights feed an A @ B^T matmul; the (E,S)->(H,hd,S) reshape only
            # splits the major dim, so no relayout.
            k_t = jnp.einsum('oe,se->os', wkt_ref[...], xn,
                             preferred_element_type=f32) + bk_ref[...]  # (E, S)
            v_t = jnp.einsum('oe,se->os', wvt_ref[...], xn,
                             preferred_element_type=f32) + bv_ref[...]  # (E, S)
            k_scr[...] = k_t.astype(compute_dtype).reshape(H, hd, S)
            v_scr[...] = v_t.astype(compute_dtype).reshape(H, hd, S)

            # Q for the whole sequence; 1/sqrt(hd) is folded into Wq/bq
            # host-side, so no per-tile scale multiply.
            q2d = (jnp.dot(xn, wq_ref[...], preferred_element_type=f32)
                   + bq_ref[...]).astype(compute_dtype)                 # (S, E)
            # Head split done once per batch element (amortized over all query
            # tiles; previously this relayout ran on every tile).
            q_scr[...] = jnp.stack(
                [q2d[:, h * hd:(h + 1) * hd] for h in range(H)], axis=0)

        # ---- per query-row tile ----
        row0 = pl.multiple_of(pl.program_id(1) * TQ, TQ)
        x_q = x_ref[0, pl.ds(row0, TQ), :].astype(f32)                  # (TQ, E)
        q_h = q_scr[:, pl.ds(row0, TQ), :]                              # (H,TQ,hd)
        k_h = k_scr[...]                                                # (H,hd,S)
        v_h = v_scr[...]                                                # (H,hd,S)

        scores = jnp.einsum('hqd,hdk->hqk', q_h, k_h,
                            preferred_element_type=f32)                 # (H,TQ,S)
        m = jnp.max(scores, axis=-1, keepdims=True)
        p = jnp.exp(scores - m)
        denom = jnp.sum(p, axis=-1, keepdims=True)
        p = (p * pl.reciprocal(denom, approx=True)).astype(compute_dtype)

        ctx = jnp.einsum('hqk,hdk->hqd', p, v_h,
                         preferred_element_type=f32)                    # (H,TQ,hd)
        ctx = ctx.astype(compute_dtype)

        # Fused output projection: per-head accumulation, no (H, TQ, E)
        # intermediate and no H-wide reduction afterwards.
        attn = jnp.zeros((TQ, E), f32)
        for h in range(H):
            attn = attn + jnp.dot(ctx[h], wph_ref[h],
                                  preferred_element_type=f32)
        attn = attn + bp_ref[...]                                       # (TQ, E)

        x1 = x_q + attn                                                 # residual 1

        # ---- MLP branch (Dropout == identity, eval semantics) ----
        xn2 = _layer_norm(x1, ln2g_ref[...].astype(f32),
                          ln2b_ref[...].astype(f32))
        h1 = jnp.dot(xn2.astype(compute_dtype), w1_ref[...],
                     preferred_element_type=f32) + b1_ref[...]
        h1 = _gelu_tanh(h1)
        mlp = jnp.dot(h1.astype(compute_dtype), w2_ref[...],
                      preferred_element_type=f32) + b2_ref[...]

        o_ref[0] = (x1 + mlp).astype(o_ref.dtype)                       # residual 2
    return kernel


def _build_call(B, S, E, H, mlp_dim, q_tile, compute_dtype, out_dtype,
                vmem_limit_bytes):
    hd = E // H
    nq = S // q_tile

    def const(shape):
        # Grid-invariant parameter: constant block index => DMA'd once and kept
        # resident (not re-fetched per grid step).
        n = len(shape)
        return pl.BlockSpec(shape, lambda b, q, _n=n: (0,) * _n)

    in_specs = [
        pl.BlockSpec((1, S, E), lambda b, q: (b, 0, 0)),   # x: full seq per batch
        const((1, E)), const((1, E)),                      # ln1 gamma / beta
        const((E, E)), const((1, E)),                      # Wq*scale (in,out), bq*scale
        const((E, E)), const((E, 1)),                      # Wk (out,in), bk
        const((E, E)), const((E, 1)),                      # Wv (out,in), bv
        const((H, hd, E)), const((1, E)),                  # Wproj per-head, bproj
        const((1, E)), const((1, E)),                      # ln2 gamma / beta
        const((E, mlp_dim)), const((1, mlp_dim)),          # W1, b1
        const((mlp_dim, E)), const((1, E)),                # W2, b2
    ]

    # Advisory cost estimate (QKV projections now counted once per batch elem).
    flops = B * (8 * S * E * E              # QKV + output projections
                 + 4 * S * S * E            # scores + context
                 + 4 * S * E * mlp_dim)     # MLP
    transcendentals = B * (H * S * S + S * mlp_dim)
    w_itemsize = jnp.dtype(compute_dtype).itemsize
    weight_bytes = (4 * E * E + 2 * E * mlp_dim) * w_itemsize
    bytes_accessed = (B * S * E * 4 + B * S * E * jnp.dtype(out_dtype).itemsize
                      + weight_bytes)

    return pl.pallas_call(
        make_encoder_kernel(H, q_tile, compute_dtype),
        out_shape=jax.ShapeDtypeStruct((B, S, E), out_dtype),
        grid_spec=pltpu.PrefetchScalarGridSpec(
            num_scalar_prefetch=0,
            grid=(B, nq),
            in_specs=in_specs,
            out_specs=pl.BlockSpec((1, q_tile, E), lambda b, q: (b, q, 0)),
            scratch_shapes=[
                pltpu.VMEM((H, S, hd), compute_dtype),   # Q, head-major
                pltpu.VMEM((H, hd, S), compute_dtype),   # K, head-major
                pltpu.VMEM((H, hd, S), compute_dtype),   # V, head-major
            ]),
        compiler_params=pltpu.CompilerParams(
            # Batch is "parallel" (megacore sharding); q must be "arbitrary"
            # because Q/K/V scratch is carried across q steps.
            dimension_semantics=("parallel", "arbitrary"),
            vmem_limit_bytes=vmem_limit_bytes,
        ),
        cost_estimate=pl.CostEstimate(
            flops=int(flops),
            transcendentals=int(transcendentals),
            bytes_accessed=int(bytes_accessed)),
    )


def transformer_encoder_block(x, params, num_heads, *, q_tile=None,
                              compute_dtype=jnp.bfloat16,
                              vmem_limit_bytes=48 * 1024 * 1024):
    """Fused pre-norm transformer encoder block (eval-mode semantics)."""
    B, S, E = x.shape
    H = num_heads
    assert E % H == 0
    hd = E // H
    mlp_dim = params["w1"].shape[1]
    if q_tile is None:
        q_tile = 128 if S % 128 == 0 else S
    assert S % q_tile == 0 and (q_tile % 8 == 0 or q_tile == S)

    f32 = jnp.float32
    cd = compute_dtype
    scale = 1.0 / math.sqrt(hd)
    wqkv, bqkv = params["wqkv"], params["bqkv"]

    # Host-side weight re-layout / bf16 cast (folded by XLA, negligible):
    w_q = (wqkv[:, :E] * scale).astype(cd)             # (in, out), scale folded
    b_q = (bqkv[:, :E] * scale).astype(f32)            # (1, E),   scale folded
    w_kT = wqkv[:, E:2 * E].T.astype(cd)               # (out, in) -> A @ B^T form
    b_k = bqkv[0, E:2 * E].reshape(E, 1).astype(f32)   # column bias for (E, S)
    w_vT = wqkv[:, 2 * E:].T.astype(cd)
    b_v = bqkv[0, 2 * E:].reshape(E, 1).astype(f32)
    w_ph = params["wproj"].reshape(H, hd, E).astype(cd)   # per-head (hd, E)

    args = (x,
            params["ln1_g"].astype(f32), params["ln1_b"].astype(f32),
            w_q, b_q, w_kT, b_k, w_vT, b_v,
            w_ph, params["bproj"].astype(f32),
            params["ln2_g"].astype(f32), params["ln2_b"].astype(f32),
            params["w1"].astype(cd), params["b1"].astype(f32),
            params["w2"].astype(cd), params["b2"].astype(f32))

    call = _build_call(B, S, E, H, mlp_dim, q_tile, cd, x.dtype,
                       vmem_limit_bytes)
    return call(*args)


# ---------------- pure-JAX reference (mirrors the PyTorch forward) -----------
def reference_block(x, p, num_heads):
    B, S, E = x.shape
    hd = E // num_heads

    def ln(v, g, b):
        m = jnp.mean(v, -1, keepdims=True)
        var = jnp.mean((v - m) ** 2, -1, keepdims=True)
        return (v - m) / jnp.sqrt(var + EPS) * g + b

    xn1 = ln(x, p["ln1_g"], p["ln1_b"])
    qkv = xn1 @ p["wqkv"] + p["bqkv"]
    qkv = qkv.reshape(B, S, 3, num_heads, hd).transpose(2, 0, 3, 1, 4)
    q, k, v = qkv[0], qkv[1], qkv[2]
    scores = jnp.einsum("bhqd,bhkd->bhqk", q, k) / math.sqrt(hd)
    probs = jax.nn.softmax(scores, axis=-1)
    ctx = jnp.einsum("bhqk,bhkd->bhqd", probs, v)
    ctx = ctx.transpose(0, 2, 1, 3).reshape(B, S, E)
    attn_out = ctx @ p["wproj"] + p["bproj"]
    x1 = x + attn_out
    xn2 = ln(x1, p["ln2_g"], p["ln2_b"])
    h = xn2 @ p["w1"] + p["b1"]
    h = 0.5 * h * (1.0 + jax.scipy.special.erf(h / math.sqrt(2.0)))  # exact GELU
    return x1 + h @ p["w2"] + p["b2"]


if __name__ == "__main__":
    # Small demo shapes: batch=2, seq=16, embed=32, heads=4, mlp=64.
    B, S, E, H, MLP = 2, 16, 32, 4, 64
    TQ = 8          # two query tiles per sequence -> exercises scratch reuse

    key = jax.random.PRNGKey(0)
    ks = jax.random.split(key, 10)
    f32 = jnp.float32
    x = jax.random.normal(ks[0], (B, S, E), f32)

    params = {
        "ln1_g": jnp.ones((1, E), f32),
        "ln1_b": jnp.zeros((1, E), f32),
        "wqkv": 0.02 * jax.random.normal(ks[1], (E, 3 * E), f32),
        "bqkv": 0.02 * jax.random.normal(ks[2], (1, 3 * E), f32),
        "wproj": 0.02 * jax.random.normal(ks[3], (E, E), f32),
        "bproj": 0.02 * jax.random.normal(ks[4], (1, E), f32),
        "ln2_g": jnp.ones((1, E), f32),
        "ln2_b": jnp.zeros((1, E), f32),
        "w1": 0.02 * jax.random.normal(ks[5], (E, MLP), f32),
        "b1": 0.02 * jax.random.normal(ks[6], (1, MLP), f32),
        "w2": 0.02 * jax.random.normal(ks[7], (MLP, E), f32),
        "b2": 0.02 * jax.random.normal(ks[8], (1, E), f32),
    }

    ref = reference_block(x, params, H)

    # f32 MXU feeds: tight check.  Tolerance covers tanh-approx GELU and the
    # approximate softmax reciprocal (combined effect ~1e-4 at these scales).
    out_f32 = jax.block_until_ready(
        transformer_encoder_block(x, params, H, q_tile=TQ,
                                  compute_dtype=jnp.float32))
    assert out_f32.shape == (B, S, E)
    assert jnp.allclose(out_f32, ref, atol=2e-3, rtol=2e-3), (
        float(jnp.max(jnp.abs(out_f32 - ref))))

    # bf16 MXU feeds (recommended production config): looser check.
    out_bf16 = jax.block_until_ready(
        transformer_encoder_block(x, params, H, q_tile=TQ,
                                  compute_dtype=jnp.bfloat16))
    assert out_bf16.shape == (B, S, E)
    assert jnp.allclose(out_bf16, ref, atol=3e-2, rtol=3e-2), (
        float(jnp.max(jnp.abs(out_bf16 - ref))))

    print("KERNEL_OK")
</pallas_src>

<mosaic_0001>
module attributes {stable_mosaic.version = 11 : i64} {
  func.func @kernel(%arg0: i32, %arg1: i32, %arg2: memref<1x16x32xf32, #tpu.memory_space<vmem>>, %arg3: memref<1x32xf32, #tpu.memory_space<vmem>>, %arg4: memref<1x32xf32, #tpu.memory_space<vmem>>, %arg5: memref<32x32xf32, #tpu.memory_space<vmem>>, %arg6: memref<1x32xf32, #tpu.memory_space<vmem>>, %arg7: memref<32x32xf32, #tpu.memory_space<vmem>>, %arg8: memref<32x1xf32, #tpu.memory_space<vmem>>, %arg9: memref<32x32xf32, #tpu.memory_space<vmem>>, %arg10: memref<32x1xf32, #tpu.memory_space<vmem>>, %arg11: memref<4x8x32xf32, #tpu.memory_space<vmem>>, %arg12: memref<1x32xf32, #tpu.memory_space<vmem>>, %arg13: memref<1x32xf32, #tpu.memory_space<vmem>>, %arg14: memref<1x32xf32, #tpu.memory_space<vmem>>, %arg15: memref<32x64xf32, #tpu.memory_space<vmem>>, %arg16: memref<1x64xf32, #tpu.memory_space<vmem>>, %arg17: memref<64x32xf32, #tpu.memory_space<vmem>>, %arg18: memref<1x32xf32, #tpu.memory_space<vmem>>, %arg19: memref<1x8x32xf32, #tpu.memory_space<vmem>>, %arg20: memref<4x16x8xf32, #tpu.memory_space<vmem>>, %arg21: memref<4x8x16xf32, #tpu.memory_space<vmem>>, %arg22: memref<4x8x16xf32, #tpu.memory_space<vmem>>) attributes {dimension_semantics = [#tpu.dimension_semantics<parallel>, #tpu.dimension_semantics<arbitrary>], iteration_bounds = array<i64: 2, 2>, scalar_prefetch = 0 : i64, scratch_operands = 3 : i64, tpu.core_type = #tpu.core_type<tc>, window_params = [{transform_indices = @transform_0, window_bounds = array<i64: 1, 16, 32>}, {pipeline_mode = #tpu.pipeline_mode<synchronous>, transform_indices = @transform_1, window_bounds = array<i64: 1, 32>}, {pipeline_mode = #tpu.pipeline_mode<synchronous>, transform_indices = @transform_2, window_bounds = array<i64: 1, 32>}, {pipeline_mode = #tpu.pipeline_mode<synchronous>, transform_indices = @transform_3, window_bounds = array<i64: 32, 32>}, {pipeline_mode = #tpu.pipeline_mode<synchronous>, transform_indices = @transform_4, window_bounds = array<i64: 1, 32>}, {pipeline_mode = #tpu.pipeline_mode<synchronous>, transform_indices = @transform_5, window_bounds = array<i64: 32, 32>}, {pipeline_mode = #tpu.pipeline_mode<synchronous>, transform_indices = @transform_6, window_bounds = array<i64: 32, 1>}, {pipeline_mode = #tpu.pipeline_mode<synchronous>, transform_indices = @transform_7, window_bounds = array<i64: 32, 32>}, {pipeline_mode = #tpu.pipeline_mode<synchronous>, transform_indices = @transform_8, window_bounds = array<i64: 32, 1>}, {pipeline_mode = #tpu.pipeline_mode<synchronous>, transform_indices = @transform_9, window_bounds = array<i64: 4, 8, 32>}, {pipeline_mode = #tpu.pipeline_mode<synchronous>, transform_indices = @transform_10, window_bounds = array<i64: 1, 32>}, {pipeline_mode = #tpu.pipeline_mode<synchronous>, transform_indices = @transform_11, window_bounds = array<i64: 1, 32>}, {pipeline_mode = #tpu.pipeline_mode<synchronous>, transform_indices = @transform_12, window_bounds = array<i64: 1, 32>}, {pipeline_mode = #tpu.pipeline_mode<synchronous>, transform_indices = @transform_13, window_bounds = array<i64: 32, 64>}, {pipeline_mode = #tpu.pipeline_mode<synchronous>, transform_indices = @transform_14, window_bounds = array<i64: 1, 64>}, {pipeline_mode = #tpu.pipeline_mode<synchronous>, transform_indices = @transform_15, window_bounds = array<i64: 64, 32>}, {pipeline_mode = #tpu.pipeline_mode<synchronous>, transform_indices = @transform_16, window_bounds = array<i64: 1, 32>}, {transform_indices = @transform_17, window_bounds = array<i64: 1, 8, 32>}]} {
    %c0_i32 = arith.constant 0 : i32
    %0 = arith.cmpi eq, %arg1, %c0_i32 : i32
    %1 = arith.extui %0 : i1 to i32
    %c0_i32_0 = arith.constant 0 : i32
    %2 = arith.cmpi ne, %1, %c0_i32_0 : i32
    scf.if %2 {
      %c0_55 = arith.constant 0 : index
      %c0_56 = arith.constant 0 : index
      %c0_57 = arith.constant 0 : index
      %104 = vector.load %arg2[%c0_55, %c0_56, %c0_57] : memref<1x16x32xf32, #tpu.memory_space<vmem>>, vector<1x16x32xf32>
      %105 = vector.shape_cast %104 : vector<1x16x32xf32> to vector<16x32xf32>
      %c0_58 = arith.constant 0 : index
      %c0_59 = arith.constant 0 : index
      %106 = vector.load %arg3[%c0_58, %c0_59] : memref<1x32xf32, #tpu.memory_space<vmem>>, vector<1x32xf32>
      %c0_60 = arith.constant 0 : index
      %c0_61 = arith.constant 0 : index
      %107 = vector.load %arg4[%c0_60, %c0_61] : memref<1x32xf32, #tpu.memory_space<vmem>>, vector<1x32xf32>
      %cst_62 = arith.constant dense<0.000000e+00> : vector<16xf32>
      %108 = vector.multi_reduction <add>, %105, %cst_62 [1] : vector<16x32xf32> to vector<16xf32>
      %109 = vector.shape_cast %108 : vector<16xf32> to vector<16x1xf32>
      %cst_63 = arith.constant 3.200000e+01 : f32
      %110 = vector.broadcast %cst_63 : f32 to vector<16x1xf32>
      %111 = arith.divf %109, %110 : vector<16x1xf32>
      %112 = vector.broadcast %111 : vector<16x1xf32> to vector<16x32xf32>
      %113 = arith.subf %105, %112 : vector<16x32xf32>
      %114 = arith.mulf %113, %113 : vector<16x32xf32>
      %cst_64 = arith.constant dense<0.000000e+00> : vector<16xf32>
      %115 = vector.multi_reduction <add>, %114, %cst_64 [1] : vector<16x32xf32> to vector<16xf32>
      %116 = vector.shape_cast %115 : vector<16xf32> to vector<16x1xf32>
      %cst_65 = arith.constant 3.200000e+01 : f32
      %117 = vector.broadcast %cst_65 : f32 to vector<16x1xf32>
      %118 = arith.divf %116, %117 : vector<16x1xf32>
      %119 = vector.broadcast %111 : vector<16x1xf32> to vector<16x32xf32>
      %120 = arith.subf %105, %119 : vector<16x32xf32>
      %cst_66 = arith.constant 9.99999974E-6 : f32
      %121 = vector.broadcast %cst_66 : f32 to vector<16x1xf32>
      %122 = arith.addf %118, %121 : vector<16x1xf32>
      %123 = math.rsqrt %122 : vector<16x1xf32>
      %124 = vector.broadcast %123 : vector<16x1xf32> to vector<16x32xf32>
      %125 = arith.mulf %120, %124 : vector<16x32xf32>
      %126 = vector.broadcast %106 : vector<1x32xf32> to vector<16x32xf32>
      %127 = arith.mulf %125, %126 : vector<16x32xf32>
      %128 = vector.broadcast %107 : vector<1x32xf32> to vector<16x32xf32>
      %129 = arith.addf %127, %128 : vector<16x32xf32>
      %c0_67 = arith.constant 0 : index
      %c0_68 = arith.constant 0 : index
      %130 = vector.load %arg7[%c0_67, %c0_68] : memref<32x32xf32, #tpu.memory_space<vmem>>, vector<32x32xf32>
      "tpu.trace_start"() <{level = 10 : i32, message = "oe,se->os"}> : () -> ()
      %cst_69 = arith.constant dense<0.000000e+00> : vector<32x16xf32>
      %131 = tpu.matmul %130, %129, %cst_69 {dimension_numbers = #tpu.dot_dimension_numbers<[1], [1], [0], [0], [0, 0, 1, 0], [], []>} : vector<32x32xf32>, vector<16x32xf32>, vector<32x16xf32> -> vector<32x16xf32>
      "tpu.trace_stop"() : () -> ()
      %c0_70 = arith.constant 0 : index
      %c0_71 = arith.constant 0 : index
      %132 = vector.load %arg8[%c0_70, %c0_71] : memref<32x1xf32, #tpu.memory_space<vmem>>, vector<32x1xf32>
      %133 = vector.broadcast %132 : vector<32x1xf32> to vector<32x16xf32>
      %134 = arith.addf %131, %133 : vector<32x16xf32>
      %c0_72 = arith.constant 0 : index
      %c0_73 = arith.constant 0 : index
      %135 = vector.load %arg9[%c0_72, %c0_73] : memref<32x32xf32, #tpu.memory_space<vmem>>, vector<32x32xf32>
      "tpu.trace_start"() <{level = 10 : i32, message = "oe,se->os"}> : () -> ()
      %cst_74 = arith.constant dense<0.000000e+00> : vector<32x16xf32>
      %136 = tpu.matmul %135, %129, %cst_74 {dimension_numbers = #tpu.dot_dimension_numbers<[1], [1], [0], [0], [0, 0, 1, 0], [], []>} : vector<32x32xf32>, vector<16x32xf32>, vector<32x16xf32> -> vector<32x16xf32>
      "tpu.trace_stop"() : () -> ()
      %c0_75 = arith.constant 0 : index
      %c0_76 = arith.constant 0 : index
      %137 = vector.load %arg10[%c0_75, %c0_76] : memref<32x1xf32, #tpu.memory_space<vmem>>, vector<32x1xf32>
      %138 = vector.broadcast %137 : vector<32x1xf32> to vector<32x16xf32>
      %139 = arith.addf %136, %138 : vector<32x16xf32>
      %140 = vector.shape_cast %134 : vector<32x16xf32> to vector<4x8x16xf32>
      %c0_77 = arith.constant 0 : index
      %c0_78 = arith.constant 0 : index
      %c0_79 = arith.constant 0 : index
      %141 = vector.load %arg21[%c0_77, %c0_78, %c0_79] : memref<4x8x16xf32, #tpu.memory_space<vmem>>, vector<4x8x16xf32>
      tpu.vector_store %arg21[%c0_77, %c0_78, %c0_79], %140 {strides = array<i32>} : memref<4x8x16xf32, #tpu.memory_space<vmem>>, vector<4x8x16xf32>,
      %142 = vector.shape_cast %139 : vector<32x16xf32> to vector<4x8x16xf32>
      %c0_80 = arith.constant 0 : index
      %c0_81 = arith.constant 0 : index
      %c0_82 = arith.constant 0 : index
      %143 = vector.load %arg22[%c0_80, %c0_81, %c0_82] : memref<4x8x16xf32, #tpu.memory_space<vmem>>, vector<4x8x16xf32>
      tpu.vector_store %arg22[%c0_80, %c0_81, %c0_82], %142 {strides = array<i32>} : memref<4x8x16xf32, #tpu.memory_space<vmem>>, vector<4x8x16xf32>,
      %c0_83 = arith.constant 0 : index
      %c0_84 = arith.constant 0 : index
      %144 = vector.load %arg5[%c0_83, %c0_84] : memref<32x32xf32, #tpu.memory_space<vmem>>, vector<32x32xf32>
      %cst_85 = arith.constant dense<0.000000e+00> : vector<16x32xf32>
      %145 = tpu.matmul %129, %144, %cst_85 {dimension_numbers = #tpu.dot_dimension_numbers<[1], [0], [0], [1], [0, 0, 1, 1], [], []>} : vector<16x32xf32>, vector<32x32xf32>, vector<16x32xf32> -> vector<16x32xf32>
      %c0_86 = arith.constant 0 : index
      %c0_87 = arith.constant 0 : index
      %146 = vector.load %arg6[%c0_86, %c0_87] : memref<1x32xf32, #tpu.memory_space<vmem>>, vector<1x32xf32>
      %147 = vector.broadcast %146 : vector<1x32xf32> to vector<16x32xf32>
      %148 = arith.addf %145, %147 : vector<16x32xf32>
      %149 = vector.extract_strided_slice %148 {offsets = [0, 0], sizes = [16, 8], strides = [1, 1]} : vector<16x32xf32> to vector<16x8xf32>
      %150 = vector.extract_strided_slice %148 {offsets = [0, 8], sizes = [16, 8], strides = [1, 1]} : vector<16x32xf32> to vector<16x8xf32>
      %151 = vector.extract_strided_slice %148 {offsets = [0, 16], sizes = [16, 8], strides = [1, 1]} : vector<16x32xf32> to vector<16x8xf32>
      %152 = vector.extract_strided_slice %148 {offsets = [0, 24], sizes = [16, 8], strides = [1, 1]} : vector<16x32xf32> to vector<16x8xf32>
      %153 = vector.shape_cast %149 : vector<16x8xf32> to vector<1x16x8xf32>
      %154 = vector.shape_cast %150 : vector<16x8xf32> to vector<1x16x8xf32>
      %155 = vector.shape_cast %151 : vector<16x8xf32> to vector<1x16x8xf32>
      %156 = vector.shape_cast %152 : vector<16x8xf32> to vector<1x16x8xf32>
      %157 = tpu.concatenate %153, %154, %155, %156 in 0 : vector<1x16x8xf32>, vector<1x16x8xf32>, vector<1x16x8xf32>, vector<1x16x8xf32> -> vector<4x16x8xf32>
      %c0_88 = arith.constant 0 : index
      %c0_89 = arith.constant 0 : index
      %c0_90 = arith.constant 0 : index
      %158 = vector.load %arg20[%c0_88, %c0_89, %c0_90] : memref<4x16x8xf32, #tpu.memory_space<vmem>>, vector<4x16x8xf32>
      tpu.vector_store %arg20[%c0_88, %c0_89, %c0_90], %157 {strides = array<i32>} : memref<4x16x8xf32, #tpu.memory_space<vmem>>, vector<4x16x8xf32>,
    } else {
    }
    %c8_i32 = arith.constant 8 : i32
    %3 = arith.muli %arg1, %c8_i32 : i32
    %4 = tpu.assume_multiple %3, 8 : i32
    %c0 = arith.constant 0 : index
    %5 = arith.index_cast %4 : i32 to index
    %c0_1 = arith.constant 0 : index
    %6 = vector.load %arg2[%c0, %5, %c0_1] : memref<1x16x32xf32, #tpu.memory_space<vmem>>, vector<1x8x32xf32>
    %7 = vector.shape_cast %6 : vector<1x8x32xf32> to vector<8x32xf32>
    %c0_2 = arith.constant 0 : index
    %8 = arith.index_cast %4 : i32 to index
    %c0_3 = arith.constant 0 : index
    %9 = vector.load %arg20[%c0_2, %8, %c0_3] : memref<4x16x8xf32, #tpu.memory_space<vmem>>, vector<4x8x8xf32>
    %c0_4 = arith.constant 0 : index
    %c0_5 = arith.constant 0 : index
    %c0_6 = arith.constant 0 : index
    %10 = vector.load %arg21[%c0_4, %c0_5, %c0_6] : memref<4x8x16xf32, #tpu.memory_space<vmem>>, vector<4x8x16xf32>
    %c0_7 = arith.constant 0 : index
    %c0_8 = arith.constant 0 : index
    %c0_9 = arith.constant 0 : index
    %11 = vector.load %arg22[%c0_7, %c0_8, %c0_9] : memref<4x8x16xf32, #tpu.memory_space<vmem>>, vector<4x8x16xf32>
    "tpu.trace_start"() <{level = 10 : i32, message = "hqd,hdk->hqk"}> : () -> ()
    %cst = arith.constant dense<0.000000e+00> : vector<4x8x16xf32>
    %12 = tpu.matmul %9, %10, %cst {dimension_numbers = #tpu.dot_dimension_numbers<[2], [1], [1], [2], [0, 0, 0, 1, 1, 2], [0], [0]>} : vector<4x8x8xf32>, vector<4x8x16xf32>, vector<4x8x16xf32> -> vector<4x8x16xf32>
    "tpu.trace_stop"() : () -> ()
    %cst_10 = arith.constant dense<0xFF800000> : vector<4x8xf32>
    %13 = vector.multi_reduction <maximumf>, %12, %cst_10 [2] : vector<4x8x16xf32> to vector<4x8xf32>
    %14 = vector.shape_cast %13 : vector<4x8xf32> to vector<4x8x1xf32>
    %15 = vector.broadcast %14 : vector<4x8x1xf32> to vector<4x8x16xf32>
    %16 = arith.subf %12, %15 : vector<4x8x16xf32>
    %17 = math.exp %16 : vector<4x8x16xf32>
    %cst_11 = arith.constant dense<0.000000e+00> : vector<4x8xf32>
    %18 = vector.multi_reduction <add>, %17, %cst_11 [2] : vector<4x8x16xf32> to vector<4x8xf32>
    %19 = vector.shape_cast %18 : vector<4x8xf32> to vector<4x8x1xf32>
    %20 = tpu.reciprocal %19 {approx = true} : vector<4x8x1xf32> -> vector<4x8x1xf32>
    %21 = vector.broadcast %20 : vector<4x8x1xf32> to vector<4x8x16xf32>
    %22 = arith.mulf %17, %21 : vector<4x8x16xf32>
    "tpu.trace_start"() <{level = 10 : i32, message = "hqk,hdk->hqd"}> : () -> ()
    %cst_12 = arith.constant dense<0.000000e+00> : vector<4x8x8xf32>
    %23 = tpu.matmul %22, %11, %cst_12 {dimension_numbers = #tpu.dot_dimension_numbers<[2], [2], [1], [1], [0, 0, 0, 1, 1, 1], [0], [0]>} : vector<4x8x16xf32>, vector<4x8x16xf32>, vector<4x8x8xf32> -> vector<4x8x8xf32>
    %cst_13 = arith.constant 0.000000e+00 : f32
    "tpu.trace_stop"() : () -> ()
    %24 = vector.broadcast %cst_13 : f32 to vector<8x32xf32>
    %25 = vector.extract_strided_slice %23 {offsets = [0, 0, 0], sizes = [1, 8, 8], strides = [1, 1, 1]} : vector<4x8x8xf32> to vector<1x8x8xf32>
    %26 = vector.shape_cast %25 : vector<1x8x8xf32> to vector<8x8xf32>
    %c0_14 = arith.constant 0 : index
    %c0_15 = arith.constant 0 : index
    %c0_16 = arith.constant 0 : index
    %27 = vector.load %arg11[%c0_14, %c0_15, %c0_16] : memref<4x8x32xf32, #tpu.memory_space<vmem>>, vector<1x8x32xf32>
    %28 = vector.shape_cast %27 : vector<1x8x32xf32> to vector<8x32xf32>
    %cst_17 = arith.constant dense<0.000000e+00> : vector<8x32xf32>
    %29 = tpu.matmul %26, %28, %cst_17 {dimension_numbers = #tpu.dot_dimension_numbers<[1], [0], [0], [1], [0, 0, 1, 1], [], []>} : vector<8x8xf32>, vector<8x32xf32>, vector<8x32xf32> -> vector<8x32xf32>
    %30 = arith.addf %24, %29 : vector<8x32xf32>
    %31 = vector.extract_strided_slice %23 {offsets = [1, 0, 0], sizes = [1, 8, 8], strides = [1, 1, 1]} : vector<4x8x8xf32> to vector<1x8x8xf32>
    %32 = vector.shape_cast %31 : vector<1x8x8xf32> to vector<8x8xf32>
    %c1 = arith.constant 1 : index
    %c0_18 = arith.constant 0 : index
    %c0_19 = arith.constant 0 : index
    %33 = vector.load %arg11[%c1, %c0_18, %c0_19] : memref<4x8x32xf32, #tpu.memory_space<vmem>>, vector<1x8x32xf32>
    %34 = vector.shape_cast %33 : vector<1x8x32xf32> to vector<8x32xf32>
    %cst_20 = arith.constant dense<0.000000e+00> : vector<8x32xf32>
    %35 = tpu.matmul %32, %34, %cst_20 {dimension_numbers = #tpu.dot_dimension_numbers<[1], [0], [0], [1], [0, 0, 1, 1], [], []>} : vector<8x8xf32>, vector<8x32xf32>, vector<8x32xf32> -> vector<8x32xf32>
    %36 = arith.addf %30, %35 : vector<8x32xf32>
    %37 = vector.extract_strided_slice %23 {offsets = [2, 0, 0], sizes = [1, 8, 8], strides = [1, 1, 1]} : vector<4x8x8xf32> to vector<1x8x8xf32>
    %38 = vector.shape_cast %37 : vector<1x8x8xf32> to vector<8x8xf32>
    %c2 = arith.constant 2 : index
    %c0_21 = arith.constant 0 : index
    %c0_22 = arith.constant 0 : index
    %39 = vector.load %arg11[%c2, %c0_21, %c0_22] : memref<4x8x32xf32, #tpu.memory_space<vmem>>, vector<1x8x32xf32>
    %40 = vector.shape_cast %39 : vector<1x8x32xf32> to vector<8x32xf32>
    %cst_23 = arith.constant dense<0.000000e+00> : vector<8x32xf32>
    %41 = tpu.matmul %38, %40, %cst_23 {dimension_numbers = #tpu.dot_dimension_numbers<[1], [0], [0], [1], [0, 0, 1, 1], [], []>} : vector<8x8xf32>, vector<8x32xf32>, vector<8x32xf32> -> vector<8x32xf32>
    %42 = arith.addf %36, %41 : vector<8x32xf32>
    %43 = vector.extract_strided_slice %23 {offsets = [3, 0, 0], sizes = [1, 8, 8], strides = [1, 1, 1]} : vector<4x8x8xf32> to vector<1x8x8xf32>
    %44 = vector.shape_cast %43 : vector<1x8x8xf32> to vector<8x8xf32>
    %c3 = arith.constant 3 : index
    %c0_24 = arith.constant 0 : index
    %c0_25 = arith.constant 0 : index
    %45 = vector.load %arg11[%c3, %c0_24, %c0_25] : memref<4x8x32xf32, #tpu.memory_space<vmem>>, vector<1x8x32xf32>
    %46 = vector.shape_cast %45 : vector<1x8x32xf32> to vector<8x32xf32>
    %cst_26 = arith.constant dense<0.000000e+00> : vector<8x32xf32>
    %47 = tpu.matmul %44, %46, %cst_26 {dimension_numbers = #tpu.dot_dimension_numbers<[1], [0], [0], [1], [0, 0, 1, 1], [], []>} : vector<8x8xf32>, vector<8x32xf32>, vector<8x32xf32> -> vector<8x32xf32>
    %48 = arith.addf %42, %47 : vector<8x32xf32>
    %c0_27 = arith.constant 0 : index
    %c0_28 = arith.constant 0 : index
    %49 = vector.load %arg12[%c0_27, %c0_28] : memref<1x32xf32, #tpu.memory_space<vmem>>, vector<1x32xf32>
    %50 = vector.broadcast %49 : vector<1x32xf32> to vector<8x32xf32>
    %51 = arith.addf %48, %50 : vector<8x32xf32>
    %52 = arith.addf %7, %51 : vector<8x32xf32>
    %c0_29 = arith.constant 0 : index
    %c0_30 = arith.constant 0 : index
    %53 = vector.load %arg13[%c0_29, %c0_30] : memref<1x32xf32, #tpu.memory_space<vmem>>, vector<1x32xf32>
    %c0_31 = arith.constant 0 : index
    %c0_32 = arith.constant 0 : index
    %54 = vector.load %arg14[%c0_31, %c0_32] : memref<1x32xf32, #tpu.memory_space<vmem>>, vector<1x32xf32>
    %cst_33 = arith.constant dense<0.000000e+00> : vector<8xf32>
    %55 = vector.multi_reduction <add>, %52, %cst_33 [1] : vector<8x32xf32> to vector<8xf32>
    %56 = vector.shape_cast %55 : vector<8xf32> to vector<8x1xf32>
    %cst_34 = arith.constant 3.200000e+01 : f32
    %57 = vector.broadcast %cst_34 : f32 to vector<8x1xf32>
    %58 = arith.divf %56, %57 : vector<8x1xf32>
    %59 = vector.broadcast %58 : vector<8x1xf32> to vector<8x32xf32>
    %60 = arith.subf %52, %59 : vector<8x32xf32>
    %61 = arith.mulf %60, %60 : vector<8x32xf32>
    %cst_35 = arith.constant dense<0.000000e+00> : vector<8xf32>
    %62 = vector.multi_reduction <add>, %61, %cst_35 [1] : vector<8x32xf32> to vector<8xf32>
    %63 = vector.shape_cast %62 : vector<8xf32> to vector<8x1xf32>
    %cst_36 = arith.constant 3.200000e+01 : f32
    %64 = vector.broadcast %cst_36 : f32 to vector<8x1xf32>
    %65 = arith.divf %63, %64 : vector<8x1xf32>
    %66 = vector.broadcast %58 : vector<8x1xf32> to vector<8x32xf32>
    %67 = arith.subf %52, %66 : vector<8x32xf32>
    %cst_37 = arith.constant 9.99999974E-6 : f32
    %68 = vector.broadcast %cst_37 : f32 to vector<8x1xf32>
    %69 = arith.addf %65, %68 : vector<8x1xf32>
    %70 = math.rsqrt %69 : vector<8x1xf32>
    %71 = vector.broadcast %70 : vector<8x1xf32> to vector<8x32xf32>
    %72 = arith.mulf %67, %71 : vector<8x32xf32>
    %73 = vector.broadcast %53 : vector<1x32xf32> to vector<8x32xf32>
    %74 = arith.mulf %72, %73 : vector<8x32xf32>
    %75 = vector.broadcast %54 : vector<1x32xf32> to vector<8x32xf32>
    %76 = arith.addf %74, %75 : vector<8x32xf32>
    %c0_38 = arith.constant 0 : index
    %c0_39 = arith.constant 0 : index
    %77 = vector.load %arg15[%c0_38, %c0_39] : memref<32x64xf32, #tpu.memory_space<vmem>>, vector<32x64xf32>
    %cst_40 = arith.constant dense<0.000000e+00> : vector<8x64xf32>
    %78 = tpu.matmul %76, %77, %cst_40 {dimension_numbers = #tpu.dot_dimension_numbers<[1], [0], [0], [1], [0, 0, 1, 1], [], []>} : vector<8x32xf32>, vector<32x64xf32>, vector<8x64xf32> -> vector<8x64xf32>
    %c0_41 = arith.constant 0 : index
    %c0_42 = arith.constant 0 : index
    %79 = vector.load %arg16[%c0_41, %c0_42] : memref<1x64xf32, #tpu.memory_space<vmem>>, vector<1x64xf32>
    %80 = vector.broadcast %79 : vector<1x64xf32> to vector<8x64xf32>
    %81 = arith.addf %78, %80 : vector<8x64xf32>
    %cst_43 = arith.constant 5.000000e-01 : f32
    %82 = vector.broadcast %cst_43 : f32 to vector<8x64xf32>
    %83 = arith.mulf %82, %81 : vector<8x64xf32>
    %84 = arith.mulf %81, %81 : vector<8x64xf32>
    %85 = arith.mulf %84, %81 : vector<8x64xf32>
    %cst_44 = arith.constant 4.471500e-02 : f32
    %86 = vector.broadcast %cst_44 : f32 to vector<8x64xf32>
    %87 = arith.mulf %86, %85 : vector<8x64xf32>
    %88 = arith.addf %81, %87 : vector<8x64xf32>
    %cst_45 = arith.constant 0.797884583 : f32
    %89 = vector.broadcast %cst_45 : f32 to vector<8x64xf32>
    %90 = arith.mulf %89, %88 : vector<8x64xf32>
    %91 = math.tanh %90 : vector<8x64xf32>
    %cst_46 = arith.constant 1.000000e+00 : f32
    %92 = vector.broadcast %cst_46 : f32 to vector<8x64xf32>
    %93 = arith.addf %92, %91 : vector<8x64xf32>
    %94 = arith.mulf %83, %93 : vector<8x64xf32>
    %c0_47 = arith.constant 0 : index
    %c0_48 = arith.constant 0 : index
    %95 = vector.load %arg17[%c0_47, %c0_48] : memref<64x32xf32, #tpu.memory_space<vmem>>, vector<64x32xf32>
    %cst_49 = arith.constant dense<0.000000e+00> : vector<8x32xf32>
    %96 = tpu.matmul %94, %95, %cst_49 {dimension_numbers = #tpu.dot_dimension_numbers<[1], [0], [0], [1], [0, 0, 1, 1], [], []>} : vector<8x64xf32>, vector<64x32xf32>, vector<8x32xf32> -> vector<8x32xf32>
    %c0_50 = arith.constant 0 : index
    %c0_51 = arith.constant 0 : index
    %97 = vector.load %arg18[%c0_50, %c0_51] : memref<1x32xf32, #tpu.memory_space<vmem>>, vector<1x32xf32>
    %98 = vector.broadcast %97 : vector<1x32xf32> to vector<8x32xf32>
    %99 = arith.addf %96, %98 : vector<8x32xf32>
    %100 = arith.addf %52, %99 : vector<8x32xf32>
    %c0_52 = arith.constant 0 : index
    %c0_53 = arith.constant 0 : index
    %c0_54 = arith.constant 0 : index
    %101 = vector.load %arg19[%c0_52, %c0_53, %c0_54] : memref<1x8x32xf32, #tpu.memory_space<vmem>>, vector<1x8x32xf32>
    %102 = vector.shape_cast %101 : vector<1x8x32xf32> to vector<8x32xf32>
    %103 = vector.shape_cast %100 : vector<8x32xf32> to vector<1x8x32xf32>
    tpu.vector_store %arg19[%c0_52, %c0_53, %c0_54], %103 {strides = array<i32>} : memref<1x8x32xf32, #tpu.memory_space<vmem>>, vector<1x8x32xf32>,
    return
  }
  func.func @transform_0(%arg0: i32, %arg1: i32) -> (i32, i32, i32) {
    %c0_i32 = arith.constant 0 : i32
    %c0_i32_0 = arith.constant 0 : i32
    %c0_i32_1 = arith.constant 0 : i32
    return %arg0, %c0_i32, %c0_i32_0 : i32, i32, i32
  }
  func.func @transform_1(%arg0: i32, %arg1: i32) -> (i32, i32) {
    %c0_i32 = arith.constant 0 : i32
    %c0_i32_0 = arith.constant 0 : i32
    %c0_i32_1 = arith.constant 0 : i32
    return %c0_i32, %c0_i32_0 : i32, i32
  }
  func.func @transform_2(%arg0: i32, %arg1: i32) -> (i32, i32) {
    %c0_i32 = arith.constant 0 : i32
    %c0_i32_0 = arith.constant 0 : i32
    %c0_i32_1 = arith.constant 0 : i32
    return %c0_i32, %c0_i32_0 : i32, i32
  }
  func.func @transform_3(%arg0: i32, %arg1: i32) -> (i32, i32) {
    %c0_i32 = arith.constant 0 : i32
    %c0_i32_0 = arith.constant 0 : i32
    %c0_i32_1 = arith.constant 0 : i32
    return %c0_i32, %c0_i32_0 : i32, i32
  }
  func.func @transform_4(%arg0: i32, %arg1: i32) -> (i32, i32) {
    %c0_i32 = arith.constant 0 : i32
    %c0_i32_0 = arith.constant 0 : i32
    %c0_i32_1 = arith.constant 0 : i32
    return %c0_i32, %c0_i32_0 : i32, i32
  }
  func.func @transform_5(%arg0: i32, %arg1: i32) -> (i32, i32) {
    %c0_i32 = arith.constant 0 : i32
    %c0_i32_0 = arith.constant 0 : i32
    %c0_i32_1 = arith.constant 0 : i32
    return %c0_i32, %c0_i32_0 : i32, i32
  }
  func.func @transform_6(%arg0: i32, %arg1: i32) -> (i32, i32) {
    %c0_i32 = arith.constant 0 : i32
    %c0_i32_0 = arith.constant 0 : i32
    %c0_i32_1 = arith.constant 0 : i32
    return %c0_i32, %c0_i32_0 : i32, i32
  }
  func.func @transform_7(%arg0: i32, %arg1: i32) -> (i32, i32) {
    %c0_i32 = arith.constant 0 : i32
    %c0_i32_0 = arith.constant 0 : i32
    %c0_i32_1 = arith.constant 0 : i32
    return %c0_i32, %c0_i32_0 : i32, i32
  }
  func.func @transform_8(%arg0: i32, %arg1: i32) -> (i32, i32) {
    %c0_i32 = arith.constant 0 : i32
    %c0_i32_0 = arith.constant 0 : i32
    %c0_i32_1 = arith.constant 0 : i32
    return %c0_i32, %c0_i32_0 : i32, i32
  }
  func.func @transform_9(%arg0: i32, %arg1: i32) -> (i32, i32, i32) {
    %c0_i32 = arith.constant 0 : i32
    %c0_i32_0 = arith.constant 0 : i32
    %c0_i32_1 = arith.constant 0 : i32
    %c0_i32_2 = arith.constant 0 : i32
    return %c0_i32, %c0_i32_0, %c0_i32_1 : i32, i32, i32
  }
  func.func @transform_10(%arg0: i32, %arg1: i32) -> (i32, i32) {
    %c0_i32 = arith.constant 0 : i32
    %c0_i32_0 = arith.constant 0 : i32
    %c0_i32_1 = arith.constant 0 : i32
    return %c0_i32, %c0_i32_0 : i32, i32
  }
  func.func @transform_11(%arg0: i32, %arg1: i32) -> (i32, i32) {
    %c0_i32 = arith.constant 0 : i32
    %c0_i32_0 = arith.constant 0 : i32
    %c0_i32_1 = arith.constant 0 : i32
    return %c0_i32, %c0_i32_0 : i32, i32
  }
  func.func @transform_12(%arg0: i32, %arg1: i32) -> (i32, i32) {
    %c0_i32 = arith.constant 0 : i32
    %c0_i32_0 = arith.constant 0 : i32
    %c0_i32_1 = arith.constant 0 : i32
    return %c0_i32, %c0_i32_0 : i32, i32
  }
  func.func @transform_13(%arg0: i32, %arg1: i32) -> (i32, i32) {
    %c0_i32 = arith.constant 0 : i32
    %c0_i32_0 = arith.constant 0 : i32
    %c0_i32_1 = arith.constant 0 : i32
    return %c0_i32, %c0_i32_0 : i32, i32
  }
  func.func @transform_14(%arg0: i32, %arg1: i32) -> (i32, i32) {
    %c0_i32 = arith.constant 0 : i32
    %c0_i32_0 = arith.constant 0 : i32
    %c0_i32_1 = arith.constant 0 : i32
    return %c0_i32, %c0_i32_0 : i32, i32
  }
  func.func @transform_15(%arg0: i32, %arg1: i32) -> (i32, i32) {
    %c0_i32 = arith.constant 0 : i32
    %c0_i32_0 = arith.constant 0 : i32
    %c0_i32_1 = arith.constant 0 : i32
    return %c0_i32, %c0_i32_0 : i32, i32
  }
  func.func @transform_16(%arg0: i32, %arg1: i32) -> (i32, i32) {
    %c0_i32 = arith.constant 0 : i32
    %c0_i32_0 = arith.constant 0 : i32
    %c0_i32_1 = arith.constant 0 : i32
    return %c0_i32, %c0_i32_0 : i32, i32
  }
  func.func @transform_17(%arg0: i32, %arg1: i32) -> (i32, i32, i32) {
    %c0_i32 = arith.constant 0 : i32
    %c0_i32_0 = arith.constant 0 : i32
    return %arg0, %arg1, %c0_i32 : i32, i32, i32
  }
}

</mosaic_0001>

<bundles_post_ra>
// kernel: tpu_custom_call.1
= control target key start
LH: loop header
LB: loop body
LE: loop exit
PB: predicated region body
PF: predicated region fallthrough
CT: control target
= control target key end

     0   :  { %s3604_s0 = inlined_call_operand.vmem [shape: f32[2,16,32], index: 0, kind: input, shape index: {}]   ;;  %s3605_s1 = inlined_call_operand.hbm [shape: f32[1,32], index: 1, kind: input, shape index: {}]   ;;  %s3606_s2 = inlined_call_operand.hbm [shape: f32[1,32], index: 2, kind: input, shape index: {}]   ;;  %s3607_s3 = inlined_call_operand.vmem [shape: f32[32,32], index: 3, kind: input, shape index: {}]   ;;  %s3608_s4 = inlined_call_operand.hbm [shape: f32[1,32], index: 4, kind: input, shape index: {}]   ;;  %s3609_s5 = inlined_call_operand.vmem [shape: f32[32,32], index: 5, kind: input, shape index: {}]   ;;  %s3610_s6 = inlined_call_operand.vmem [shape: f32[32,1], index: 6, kind: input, shape index: {}]   ;;  %s3611_s7 = inlined_call_operand.vmem [shape: f32[32,32], index: 7, kind: input, shape index: {}]   ;;  %s3612_s8 = inlined_call_operand.vmem [shape: f32[32,1], index: 8, kind: input, shape index: {}]   ;;  %s3613_s9 = inlined_call_operand.vmem [shape: f32[4,8,32], index: 9, kind: input, shape index: {}]   ;;  %s3614_s10 = inlined_call_operand.vmem [shape: f32[1,32], index: 10, kind: input, shape index: {}]   ;;  %s3615_s11 = inlined_call_operand.vmem [shape: f32[1,32], index: 11, kind: input, shape index: {}]   ;;  %s3616_s12 = inlined_call_operand.vmem [shape: f32[1,32], index: 12, kind: input, shape index: {}]   ;;  %s3617_s13 = inlined_call_operand.hbm [shape: f32[32,64], index: 13, kind: input, shape index: {}]   ;;  %s3618_s14 = inlined_call_operand.vmem [shape: f32[1,64], index: 14, kind: input, shape index: {}]   ;;  %s3619_s15 = inlined_call_operand.vmem [shape: f32[64,32], index: 15, kind: input, shape index: {}]   ;;  %s3620_s16 = inlined_call_operand.vmem [shape: f32[1,32], index: 16, kind: input, shape index: {}]   ;;  %s3621_s17 = inlined_call_operand.hbm [shape: f32[2,16,32], index: 17, kind: output, shape index: {}]  }
   0x1   :  { %3640 = sst [smem:[#allocation28_spill]] %s3604_s0 }
   0x2   :  { %3641 = sst [smem:[#allocation29_spill]] %s3605_s1 }
   0x3   :  { %3642 = sst [smem:[#allocation30_spill]] %s3616_s12 }
   0x4   :  { %3643 = sst [smem:[#allocation31_spill]] %s3618_s14 }
   0x5   :  { %3644 = sst [smem:[#allocation32_spill]] %s3619_s15 }
   0x6   :  { %3645 = sst [smem:[#allocation33_spill]] %s3620_s16 }
   0x7   :  { %3646 = sst [smem:[#allocation34_spill]] %s3621_s17 }
   0x8   :  { %22 = vsyncpa [#allocation6], 0 }
   0x9   :  { %23 = vsyncpa [#allocation9], 0 }
   0xa   :  { %24 = vsyncpa [#allocation12], 0 }
   0xb   :  { %25 = vsyncpa [#allocation7], 0 }
   0xc   :  { %27 = vsyncpa [#allocation7 + $0x1], 0  ;;  %s3115_s24 = smov 0   ;;  %s3117_s25 = smov 0  }
   0xd   :  { %s3119_s26 = smov 0   ;;  %s3121_s27 = smov 0  }
   0xe   :  { %s3123_s28 = smov 0   ;;  %s3125_s29 = smov 0  }
   0xf   :  { %s3127_s0 = smov 0   ;;  %s3129_s30 = smov 0  }
  0x10 LB: > { %3647 = sst [smem:[#allocation18_spill]] %s2981_s24  ;;  %s2362_s18 = sadd.s32 4294967295, %s3009_s30   ;;  %s3009_s30 = sphi %s3129_s30, %s33_s30   ;;  %s3005_s0 = sphi %s3127_s0, %s3684_s0   ;;  %s3001_s29 = sphi %s3125_s29, %s3683_s29   ;;  %s2997_s28 = sphi %s3123_s28, %s3682_s28   ;;  %s2993_s27 = sphi %s3121_s27, %s3681_s27   ;;  %s2989_s26 = sphi %s3119_s26, %s3680_s26   ;;  %s2985_s25 = sphi %s3117_s25, %s3686_s25   ;;  %s2981_s24 = sphi %s3115_s24, %s3685_s24  }
  0x11   : > { %3648 = sst [smem:[#allocation19_spill]] %s2989_s26  ;;  %s2363_s19 = sadd.s32 4294967294, %s3009_s30  }
  0x12   : > { %3649 = sst [smem:[#allocation20_spill]] %s3001_s29  ;;  %s42_s1 = sadd.s32 1, %s3001_s29 }
  0x13   : > { %3650 = sst [smem:[#allocation21_spill]] %s3005_s0  ;;  %s45_s20 = sadd.s32 1, %s3005_s0 }
  0x14   : > { %3651 = sst [smem:[#allocation22_spill]] %s3009_s30  ;;  %p43_p0 = scmp.ge.s32.totalorder %s42_s1, 2 }
  0x15   : > { %s416_s21 = sadd.s32 1, %s2989_s26  ;;  %p426_p1 = scmp.ne.s32.totalorder %s2989_s26, %s2985_s25 }
  0x16   : > { %p427_p2 = scmp.eq.s32.totalorder %s2362_s18, 3  ;;  %s3688_s1 = smov (%p43_p0, %s42_s1), 0 }
  0x17   : > { %3652 = sst [smem:[#allocation23_spill]] %s3688_s1  ;;  %s3690_s20 = smov (!%p43_p0, %s45_s20), %s3005_s0 }
  0x18   : > { %s412_s22 = ssub.s32 %s3001_s29, %s3688_s1  ;;  %p3167_p3 = por %p427_p2, %p426_p1 }
  0x19   : > { %p47_p4 = scmp.ge.s32.totalorder %s3690_s20, 2  ;;  %p432_p5 = scmp.ne.s32.totalorder %s2985_s25, %s2981_s24 }
  0x1a   : > { %s3653_s23 = scalar_select %p3167_p3, 1, 0 }
  0x1b   : > { %p433_p6 = scmp.eq.s32.totalorder %s2363_s19, 3  ;;  %p2364_p7 = scmp.ge.s32.totalorder %s3009_s30, 1 }
  0x1c   : > { %3654 = sst [smem:[#allocation24_spill]] %s3653_s23  ;;  %s3692_s20 = smov (%p47_p4, %s3690_s20), 0 }
  0x1d   : > { %3655 = sst [smem:[#allocation25_spill]] %s3692_s20  ;;  %p3176_p8 = por %p433_p6, %p432_p5 }
  0x1e   : > { %p440_p9 = scmp.lt.s32.totalorder %s3009_s30, 5  ;;  %s411_s16 = ssub.s32 %s3005_s0, %s3692_s20 }
  0x1f   : > { %s3656_s17 = scalar_select %p3176_p8, 1, 0 }
  0x20   : > { %s413_s14 = sor.u32 %s412_s22, %s411_s16  ;;  %p3183_p10 = pnand %p2364_p7, %p440_p9 }
  0x21   : > { %3657 = sst [smem:[#allocation26_spill]] %s3656_s17  ;;  %p414_p11 = scmp.eq.s32.totalorder %s413_s14, 0 }
  0x22   : > { %s3658_s1 = scalar_select %p3183_p10, 1, 0 }
  0x23   : > { %p3187_p12 = scmp.eq.s32.totalorder %s2362_s18, 0  ;;  %p2662_p13 = pneg %p3183_p10 }
  0x24   : > { %s3194_s19 = scalar_select %p414_p11, %s2989_s26, %s416_s21  }
  0x25   : > { %s3659_s29 = scalar_select %p3187_p12, 1, 0 }
  0x26   : > { %3660 = sst [smem:[#allocation27_spill]] %s3194_s19  ;;  %p3198_p0 = pnand %p3187_p12, %p2662_p13 }
  0x27   : > { %s3011_s16 = smov [#allocation8]   ;;  %s2791_s18 = scalar_lea.hbm %s3606_s2, 16 }
  0x28   : > { %s464_s22 = sshll.u32 %s3011_s16, 4  ;;  %p2792_p1 = scmp.ne.s32.totalorder %s3606_s2, %s2791_s18  ;;  %s465_s22 = int_to_ptr.vmem [resolvable:$true] %s464_s22 }
  0x29   : > { %p3210_p2 = pneg %p3198_p0  ;;  %p2798_p6 = scmp.lt.u32.totalorder %s2791_s18, %s3606_s2 }
  0x2b   : > { %p2794_p4 = pnand %p3210_p2, %p2792_p1 }
  0x2d   : > { %p2795_p5 = pneg %p2794_p4 }
  0x2f   : > { %p2800_p7 = pnand %p2798_p6, %p2795_p5 }
  0x31   : > { %2803 = shalt.err (!%p2800_p7)
}
  0x32   : > { %s2804_s20 = scalar_lea.vmem %s465_s22, 16  ;;  %s2811_s24 = scalar_lea.vmem %s465_s22, 32 }
  0x33   : > { %p2805_p9 = scmp.ne.s32.totalorder %s465_s22, %s2804_s20  ;;  %p2812_p8 = scmp.lt.s32.totalorder %s465_s22, %s465_s22 }
  0x34   : > { %p2813_p3 = scmp.lt.s32.totalorder %s2811_s24, %s2804_s20 }
  0x35   : > { %p2807_p11 = pnand %p2805_p9, %p3210_p2 }
  0x36   : > { %p2814_p12 = por %p2813_p3, %p2812_p8 }
  0x37   : > { %p2808_p13 = pneg %p2807_p11 }
  0x39   : > { %p2815_p10 = pnand %p2814_p12, %p2808_p13 }
  0x3b   : > { %2818 = shalt.err (!%p2815_p10)
}
  0x3c   : > { %2668 = dma.hbm_to_vmem [thread:$0]  (!%p3198_p0), %s3606_s2, 16, %s465_s22, [#allocation9]  }
  0x3d   : > { %s3012_s19 = smov [#allocation5]   ;;  %s3013_s16 = smov [#allocation10]  }
  0x3e   : > { %s453_s18 = sshll.u32 %s3012_s19, 4  ;;  %s478_s26 = sshll.u32 %s3013_s16, 4  ;;  %s454_s18 = int_to_ptr.vmem [resolvable:$true] %s453_s18  ;;  %s3226_s26 = int_to_ptr.vmem [resolvable:$true] %s478_s26 }
  0x3f   : > { %s3663_s20 = sld [smem:[#allocation29_spill]] }
  0x45   : > { %s2819_s24 = scalar_lea.hbm %s3663_s20, 16 }
  0x46   : > { %p2820_p3 = scmp.ne.s32.totalorder %s3663_s20, %s2819_s24  ;;  %p2826_p12 = scmp.lt.u32.totalorder %s2819_s24, %s3663_s20 }
  0x48   : > { %p2822_p8 = pnand %p2820_p3, %p3210_p2 }
  0x4a   : > { %p2823_p10 = pneg %p2822_p8 }
  0x4c   : > { %p2828_p1 = pnand %p2826_p12, %p2823_p10 }
  0x4e   : > { %2831 = shalt.err (!%p2828_p1)
}
  0x4f   : > { %s2832_s14 = scalar_lea.vmem %s454_s18, 16  ;;  %s2839_s30 = scalar_lea.vmem %s454_s18, 32 }
  0x50   : > { %p2833_p4 = scmp.ne.s32.totalorder %s454_s18, %s2832_s14  ;;  %p2840_p7 = scmp.lt.s32.totalorder %s454_s18, %s454_s18 }
  0x51   : > { %p2841_p9 = scmp.lt.s32.totalorder %s2839_s30, %s2832_s14 }
  0x52   : > { %p2835_p5 = pnand %p2833_p4, %p3210_p2 }
  0x53   : > { %p2842_p11 = por %p2841_p9, %p2840_p7 }
  0x54   : > { %p2836_p6 = pneg %p2835_p5 }
  0x56   : > { %p2843_p13 = pnand %p2842_p11, %p2836_p6 }
  0x58   : > { %2846 = shalt.err (!%p2843_p13)
}
  0x59   : > { %2665 = dma.hbm_to_vmem [thread:$0]  (!%p3198_p0), %s3663_s20, 16, %s454_s18, [#allocation6]  }
  0x5a   : > { %s2847_s16 = scalar_lea.hbm %s3608_s4, 16 }
  0x5b   : > { %p2848_p3 = scmp.ne.s32.totalorder %s3608_s4, %s2847_s16  ;;  %p2854_p12 = scmp.lt.u32.totalorder %s2847_s16, %s3608_s4 }
  0x5d   : > { %p2850_p8 = pnand %p2848_p3, %p3210_p2 }
  0x5f   : > { %p2851_p10 = pneg %p2850_p8 }
  0x61   : > { %p2856_p1 = pnand %p2854_p12, %p2851_p10 }
  0x63   : > { %2859 = shalt.err (!%p2856_p1)
}
  0x64   : > { %s2860_s18 = scalar_lea.vmem %s3226_s26, 16  ;;  %s2867_s30 = scalar_lea.vmem %s3226_s26, 32 }
  0x65   : > { %p2861_p4 = scmp.ne.s32.totalorder %s3226_s26, %s2860_s18  ;;  %p2868_p7 = scmp.lt.s32.totalorder %s3226_s26, %s3226_s26 }
  0x66   : > { %p2869_p9 = scmp.lt.s32.totalorder %s2867_s30, %s2860_s18 }
  0x67   : > { %p2863_p5 = pnand %p2861_p4, %p3210_p2 }
  0x68   : > { %p2870_p11 = por %p2869_p9, %p2868_p7 }
  0x69   : > { %p2864_p6 = pneg %p2863_p5 }
  0x6b   : > { %p2871_p13 = pnand %p2870_p11, %p2864_p6 }
  0x6d   : > { %2874 = shalt.err (!%p2871_p13)
}
  0x6e   : > { %2671 = dma.hbm_to_vmem [thread:$0]  (!%p3198_p0), %s3608_s4, 16, %s3226_s26, [#allocation9]  }
  0x6f   : > { %s3014_s23 = smov [#allocation11]   ;;  %s2875_s0 = scalar_lea.hbm %s3617_s13, 512 }
  0x70   : > { %s512_s19 = sshll.u32 %s3014_s23, 4  ;;  %p2876_p3 = scmp.ne.s32.totalorder %s3617_s13, %s2875_s0  ;;  %s513_s19 = int_to_ptr.vmem [resolvable:$true] %s512_s19 }
  0x71   : > { %p2882_p12 = scmp.lt.u32.totalorder %s2875_s0, %s3617_s13 }
  0x72   : > { %p2878_p8 = pnand %p2876_p3, %p3210_p2 }
  0x74   : > { %p2879_p10 = pneg %p2878_p8 }
  0x76   : > { %p2884_p1 = pnand %p2882_p12, %p2879_p10 }
  0x78   : > { %2887 = shalt.err (!%p2884_p1)
}
  0x79   : > { %s2888_s26 = scalar_lea.vmem %s513_s19, 512  ;;  %p2896_p7 = scmp.lt.s32.totalorder %s513_s19, %s513_s19 }
  0x7a   : > { %p2889_p4 = scmp.ne.s32.totalorder %s513_s19, %s2888_s26  ;;  %p2897_p9 = scmp.lt.s32.totalorder %s2888_s26, %s2888_s26 }
  0x7c   : > { %p2891_p5 = pnand %p2889_p4, %p3210_p2  ;;  %p2898_p11 = por %p2897_p9, %p2896_p7 }
  0x7e   : > { %p2892_p6 = pneg %p2891_p5 }
  0x80   : > { %p2899_p13 = pnand %p2898_p11, %p2892_p6 }
  0x82   : > { %2902 = shalt.err (!%p2899_p13)
}
  0x83   : > { %s3015_s12 = smov 128   ;;  %s3016_s15 = smov 8  }
  0x84   : > { %2674 = dma.hbm_to_vmem [thread:$0]  (!%p3198_p0), %s3617_s13, 512, %s513_s19, [#allocation12], %s3015_s12, %s3015_s12, %s3016_s15  }
  0x85   : > { %p3664_p3 = scmp.ne.s32.totalorder %s3658_s1, 0 }
  0x86   : > { %p3665_p8 = scmp.ne.s32.totalorder (!%p3664_p3), %s3659_s29, 0 }
  0x87   : > { %545 = sbr.rel (%p3664_p3) target bundleno = 2587 (0xa1b), region = 88 }
  0x8e   : > { %2964 = dma.done.wait (%p3665_p8), [#allocation6], 16  }
  0x8f   : > { %2966 = vsyncadd (%p3665_p8), [#allocation6], 4294967280 }
  0x90   : > { %2968 = dma.done.wait (%p3665_p8), [#allocation9], 32  }
  0x91   : > { %2970 = vsyncadd (%p3665_p8), [#allocation9], 4294967264 }
  0x92   : > { %2972 = dma.done.wait (%p3665_p8), [#allocation12], 512  }
  0x93   : > { %2974 = vsyncadd (%p3665_p8), [#allocation12], 4294966784  ;;  %s606_s17 = sand.u32 1, %s2985_s25   ;;  %p609_p0 = scmp.lt.s32.totalorder %s2997_s28, 1 }
  0x94   : > { %s3306_s1 = sshll.u32 %s606_s17, 3  ;;  %s3666_s22 = sld [smem:[#allocation28_spill]] }
  0x95   : > { %s610_s21 = scalar_select %p609_p0, %s2997_s28, 1 }
  0x96   : > { %s608_s18 = scalar_lea.vmem [#allocation13], %s3306_s1  ;;  %p2378_p2 = scmp.ne.s32.totalorder %s2993_s27, 0 }
  0x97   : > { %s2428_s19 = sshll.u32 %s610_s21, 4  ;;  %vm622_vm0 = vcmask (!%p2378_p2), 261120   ;;  %v666_v14 = vld [vmem:[%s3609_s5] sm:$0xff] (!%p2378_p2)  ;;  %v671_v15 = vld [vmem:[%s3610_s6 + $0x8] sm:$0xff] (!%p2378_p2)  ;;  %v3017_v17 = vmov (!%p2378_p2), 0   ;;  %v672_v19 = vld [vmem:[%s3610_s6 + $0x10] sm:$0xff] (!%p2378_p2) }
  0x98   : > { %617 = sbr.rel (%p2378_p2) target bundleno = 830 (0x33e), region = 108  ;;  %2489 = vmatprep.mubr.msk.f32.mxu0 (!%p2378_p2), %vm622_vm0, %v666_v14  ;;  %v670_v16 = vld [vmem:[%s3610_s6] sm:$0xff] (!%p2378_p2)  ;;  %2766 = vset.pattern.permute.xlu1 (!%p2378_p2), %v3017_v17  ;;  %v673_v20 = vld [vmem:[%s3610_s6 + $0x18] sm:$0xff] (!%p2378_p2)  ;;  %v802_v22 = vld [vmem:[%s3612_s8 + $0x8] sm:$0xff] (!%p2378_p2)  ;;  %vm922_vm2 = vcmask (!%p2378_p2), 130048   ;;  %vm1037_vm3 = vcmask (!%p2378_p2), 64512  }
  0x99   : > { %2765 = vset.pattern.permute.xlu0 (!%p2378_p2), %v3017_v17  ;;  %v797_v18 = vld [vmem:[%s3611_s7] sm:$0xff] (!%p2378_p2)  ;;  %v803_v23 = vld [vmem:[%s3612_s8 + $0x10] sm:$0xff] (!%p2378_p2)  ;;  %v804_v24 = vld [vmem:[%s3612_s8 + $0x18] sm:$0xff] (!%p2378_p2)  ;;  %s3018_s15 = smov (!%p2378_p2), 120   ;;  %s3019_s23 = smov (!%p2378_p2), 112  }
  0x9a   : > { %s3312_s14 = scalar_lea.vmem %s3666_s22, %s2428_s19  ;;  %2499 = vmatprep.mubr.msk.f32.mxu1 (!%p2378_p2), %vm622_vm0, %v797_v18  ;;  %v801_v21 = vld [vmem:[%s3612_s8] sm:$0xff] (!%p2378_p2)  ;;  %v932_v40 = vld [vmem:[%s3607_s3 + $0x8] sm:$0xff] (!%p2378_p2)  ;;  %vm2607_vm1 = vmpackc.low (!%p2378_p2), %vm622_vm0, %vm622_vm0  ;;  %s3020_s16 = smov (!%p2378_p2), 104  }
  0x9b   : > { %v618_v0 = vld [vmem:[%s3312_s14] sm:$0xff] (!%p2378_p2)  ;;  %v619_v1 = vld [vmem:[%s3312_s14 + $0x8] sm:$0xff] (!%p2378_p2)  ;;  %v933_v45 = vld [vmem:[%s3607_s3 + $0x10] sm:$0xff] (!%p2378_p2) }
  0x9c   : > { %v623_v2 = vsel (!%p2378_p2), %vm622_vm0, %v618_v0, 0.0  ;;  %v626_v3 = vsel (!%p2378_p2), %vm622_vm0, %v619_v1, 0.0  ;;  %v2379_v33 = vld [vmem:[#allocation5] ss:$0 sm:$0xff] (!%p2378_p2)  ;;  %v2380_v37 = vld [vmem:[#allocation8] ss:$0 sm:$0xff] (!%p2378_p2) }
  0x9d   : > { %624 = vadd.xlane.f32.xlu0 (!%p2378_p2), %v623_v2  ;;  %v931_v39 = vld [vmem:[%s3607_s3] sm:$0xff] (!%p2378_p2)  ;;  %v934_v46 = vld [vmem:[%s3607_s3 + $0x18] sm:$0xff] (!%p2378_p2)  ;;  %v667_v47 = vld [vmem:[%s3609_s5 + $0x8] sm:$0xff] (!%p2378_p2) }
  0x9e   : > { %v2618_v44 = vpack.c.bf16 (!%p2378_p2), %v932_v40, %v931_v39  ;;  %v798_v48 = vld [vmem:[%s3611_s7 + $0x8] sm:$0xff] (!%p2378_p2)  ;;  %v668_v49 = vld [vmem:[%s3609_s5 + $0x10] sm:$0xff] (!%p2378_p2)  ;;  %v2622_v50 = vpack.c.bf16 (!%p2378_p2), %v934_v46, %v933_v45  ;;  %v669_v52 = vld [vmem:[%s3609_s5 + $0x18] sm:$0xff] (!%p2378_p2) }
  0x9f   : > { %v799_v51 = vld [vmem:[%s3611_s7 + $0x10] sm:$0xff]  ;;  %v800_v53 = vld [vmem:[%s3611_s7 + $0x18] sm:$0xff] }
  0xa1   : > { %627 = vadd.xlane.f32.xlu0 %v626_v3 }
  0xb7   : > { %676 = vperm.xlu0 %2765, %v670_v16  }
 0x12a   : > { %v625_v4 = vpop.xlane.xlu0 %624 }
 0x12b   : > { %v630_v5 = vmul.f32 0.03125, %v625_v4 }
 0x12d   : > { %v632_v6 = vsub.f32 %v618_v0, %v630_v5 }
 0x12e   : > { %v628_v7 = vpop.xlane.xlu0 %627 }
 0x12f   : > { %v631_v8 = vmul.f32 0.03125, %v628_v7  ;;  %v634_v9 = vmul.f32 %v632_v6, %v632_v6 }
 0x131   : > { %v633_v10 = vsub.f32 %v619_v1, %v631_v8  ;;  %v636_v11 = vsel %vm622_vm0, %v634_v9, 0.0 }
 0x132   : > { %637 = vadd.xlane.f32.xlu1 %v636_v11 }
 0x133   : > { %v635_v12 = vmul.f32 %v633_v10, %v633_v10 }
 0x135   : > { %v639_v13 = vsel %vm622_vm0, %v635_v12, 0.0 }
 0x136   : > { %640 = vadd.xlane.f32.xlu1 %v639_v13  ;;  %v677_v60 = vpop.permute.xlu0 %676  ;;  %v2393_v13 = vld [vmem:[#allocation10] ss:$0 sm:$0xff] }
 0x147   : > { %681 = vperm.xlu1 %2766, %v671_v15  }
 0x14b   : > { %686 = vperm.xlu1 %2766, %v672_v19  }
 0x14f   : > { %691 = vperm.xlu1 %2766, %v673_v20  }
 0x153   : > { %807 = vperm.xlu1 %2766, %v801_v21  }
 0x157   : > { %812 = vperm.xlu1 %2766, %v802_v22  }
 0x15b   : > { %817 = vperm.xlu1 %2766, %v803_v23  }
 0x15f   : > { %822 = vperm.xlu1 %2766, %v804_v24  }
 0x1bf   : > { %v638_v25 = vpop.xlane.xlu1 %637 }
 0x1c0   : > { %v642_v26 = vmul.f32 0.03125, %v638_v25 }
 0x1c2   : > { %v644_v27 = vadd.f32 1e-05, %v642_v26 }
 0x1c3   : > { %v641_v28 = vpop.xlane.xlu1 %640 }
 0x1c4   : > { %2767 = vrsqrt.f32 %v644_v27  ;;  %v643_v29 = vmul.f32 0.03125, %v641_v28 }
 0x1c6   : > { %v645_v30 = vadd.f32 1e-05, %v643_v29 }
 0x1c7   : > { %v682_v54 = vpop.permute.xlu1 %681 }
 0x1c8   : > { %2769 = vrsqrt.f32 %v645_v30 }
 0x1cb   : > { %v687_v55 = vpop.permute.xlu1 %686 }
 0x1ce   : > { %v2768_v31 = vpop.eup %2767 }
 0x1cf   : > { %v648_v32 = vmul.f32 %v2768_v31, %v632_v6  ;;  %v692_v56 = vpop.permute.xlu1 %691 }
 0x1d1   : > { %v656_v36 = vmul.f32 %v2379_v33, %v648_v32 }
 0x1d2   : > { %v2770_v34 = vpop.eup %2769 }
 0x1d3   : > { %v649_v35 = vmul.f32 %v2770_v34, %v633_v10  ;;  %v664_v41 = vadd.f32 %v2380_v37, %v656_v36  ;;  %v808_v57 = vpop.permute.xlu1 %807 }
 0x1d5   : > { %v657_v38 = vmul.f32 %v2379_v33, %v649_v35 }
 0x1d7   : > { %v665_v42 = vadd.f32 %v2380_v37, %v657_v38  ;;  %v813_v58 = vpop.permute.xlu1 %812 }
 0x1d9   : > { %v2606_v43 = vpack.c.bf16 %v665_v42, %v664_v41 }
 0x1db   : > { %2608 = vmatprep.subr.msk.bf16.mxu0 %vm2607_vm1, %v2606_v43  ;;  %2614 = vmatprep.subr.msk.bf16.mxu1 %vm2607_vm1, %v2606_v43  ;;  %v818_v59 = vpop.permute.xlu1 %817 }
 0x1dc   : > { %2611 = vmatpush3.bf16.xpose.msk.msra.mxu0 %vm2607_vm1, %v2606_v43  ;;  %2617 = vmatpush3.bf16.xpose.msk.msra.mxu1 %vm2607_vm1, %v2606_v43 }
 0x1dd   : > { %2619 = vmatprep.subr.bf16.mxu0 %v2618_v44 }
 0x1df   : > { %v823_v5 = vpop.permute.xlu1 %822 }
 0x1e3   : > { %2490 = vmatmul.mubr.msk.f32.vlgmr.msra.gmra.mrb[0].mxu0 %vm622_vm0, %v667_v47  ;;  %2500 = vmatmul.mubr.msk.f32.vlgmr.msra.gmra.mrb[0].mxu1 %vm622_vm0, %v798_v48 }
 0x1e4   : > { %2621 = vmatpush3.bf16.msra.mxu0 %v2618_v44  ;;  %2492 = vmatprep.mubr.msk.f32.mxu0 %vm622_vm0, %v668_v49 }
 0x1e5   : > { %2623 = vmatprep.subr.bf16.mxu0 %v2622_v50  ;;  %2502 = vmatprep.mubr.msk.f32.mxu1 %vm622_vm0, %v799_v51 }
 0x1e7   : > { %2493 = vmatmul.mubr.msk.f32.gmra.mrb[2].mxu0 %vm622_vm0, %v669_v52  ;;  %2503 = vmatmul.mubr.msk.f32.gmra.mrb[2].mxu1 %vm622_vm0, %v800_v53 }
 0x1e8   : > { %2625 = vmatpush3.bf16.msra.mxu0 %v2622_v50  ;;  %2513 = vmatprep.mubr.msk.f32.mxu0 %vm622_vm0, %v664_v41 }
 0x1eb   : > { %2514 = vmatmul.mubr.msk.f32.vlgmr.msra.gmra.mrb[4].mxu0 %vm622_vm0, %v665_v42 }
 0x2b6   : > { %v2491_v61 = vpop.f32.mrb[0].mxu0  ;;  %v2501_v62 = vpop.f32.mrb[0].mxu1 }
 0x2b7   : > { %v784_v63 = vadd.f32 %v2491_v61, %v682_v54  ;;  %v778_v0 = vpop.f32.mrb[1].mxu0  ;;  %v909_v1 = vadd.f32 %v2501_v62, %v813_v58  ;;  %v903_v2 = vpop.f32.mrb[1].mxu1 }
 0x2b8   : > { %v779_v3 = vadd.f32 %v778_v0, %v677_v60  ;;  %v904_v4 = vadd.f32 %v903_v2, %v808_v57 }
 0x2b9   : > { %924 = vst.msk [vmem:[#allocation3 + $0x8] sm:$0xff] %vm922_vm2, %v784_v63  ;;  %928 = vst.msk [vmem:[#allocation4 + $0x8] sm:$0xff] %vm922_vm2, %v909_v1 }
 0x2ba   : > { %923 = vst.msk [vmem:[#allocation3] sm:$0xff] %vm922_vm2, %v779_v3  ;;  %v2494_v6 = vpop.f32.mrb[2].mxu0  ;;  %927 = vst.msk [vmem:[#allocation4] sm:$0xff] %vm922_vm2, %v904_v4  ;;  %v2504_v7 = vpop.f32.mrb[2].mxu1 }
 0x2bb   : > { %v788_v8 = vpop.f32.mrb[3].mxu0  ;;  %v794_v9 = vadd.f32 %v2494_v6, %v692_v56  ;;  %v913_v10 = vpop.f32.mrb[3].mxu1  ;;  %v919_v11 = vadd.f32 %v2504_v7, %v823_v5 }
 0x2bc   : > { %v789_v12 = vadd.f32 %v788_v8, %v687_v55  ;;  %v914_v14 = vadd.f32 %v913_v10, %v818_v59 }
 0x2bd   : > { %926 = vst.msk [vmem:[#allocation3 + $0x18] sm:$0xff] %vm922_vm2, %v794_v9  ;;  %930 = vst.msk [vmem:[#allocation4 + $0x18] sm:$0xff] %vm922_vm2, %v919_v11 }
 0x2be   : > { %925 = vst.msk [vmem:[#allocation3 + $0x10] sm:$0xff] %vm922_vm2, %v789_v12  ;;  %v2515_v15 = vpop.f32.mrb[4].mxu0  ;;  %929 = vst.msk [vmem:[#allocation4 + $0x10] sm:$0xff] %vm922_vm2, %v914_v14 }
 0x2bf   : > { %v1014_v16 = vadd.f32 %v2515_v15, %v2393_v13  ;;  %v1008_v17 = vpop.f32.mrb[5].mxu0 }
 0x2c0   : > { %v1009_v18 = vadd.f32 %v2393_v13, %v1008_v17 }
 0x2c1   : > { %1039 = vst.msk [vmem:[#allocation2 + $0x8] sm:$0xff] %vm1037_vm3, %v1014_v16  ;;  %1021 = vrot.lane.b32.xlu0 %v1014_v16, %s3018_s15 }
 0x2c2   : > { %1038 = vst.msk [vmem:[#allocation2] sm:$0xff] %vm1037_vm3, %v1009_v18  ;;  %1019 = vrot.lane.b32.xlu1 %v1009_v18, %s3018_s15 }
 0x2c5   : > { %1027 = vrot.lane.b32.xlu0 %v1014_v16, %s3019_s23 }
 0x2c6   : > { %1025 = vrot.lane.b32.xlu1 %v1009_v18, %s3019_s23 }
 0x2c9   : > { %1033 = vrot.lane.b32.xlu0 %v1014_v16, %s3020_s16 }
 0x2ca   : > { %1031 = vrot.lane.b32.xlu1 %v1009_v18, %s3020_s16 }
 0x333   : > { %v1022_v19 = vpop.permute.xlu0 %1021 }
 0x334   : > { %1041 = vst.msk [vmem:[#allocation2 + $0x18] sm:$0xff] %vm1037_vm3, %v1022_v19  ;;  %v1020_v20 = vpop.permute.xlu1 %1019 }
 0x335   : > { %1040 = vst.msk [vmem:[#allocation2 + $0x10] sm:$0xff] %vm1037_vm3, %v1020_v20 }
 0x337   : > { %v1028_v21 = vpop.permute.xlu0 %1027 }
 0x338   : > { %1043 = vst.msk [vmem:[#allocation2 + $0x28] sm:$0xff] %vm1037_vm3, %v1028_v21  ;;  %v1026_v22 = vpop.permute.xlu1 %1025 }
 0x339   : > { %1042 = vst.msk [vmem:[#allocation2 + $0x20] sm:$0xff] %vm1037_vm3, %v1026_v22 }
 0x33b   : > { %v1034_v23 = vpop.permute.xlu0 %1033 }
 0x33c   : > { %1045 = vst.msk [vmem:[#allocation2 + $0x38] sm:$0xff] %vm1037_vm3, %v1034_v23  ;;  %v1032_v24 = vpop.permute.xlu1 %1031 }
 0x33d   : > { %1044 = vst.msk [vmem:[#allocation2 + $0x30] sm:$0xff] %vm1037_vm3, %v1032_v24 }
 0x33e PF: > { %v1054_v25 = vld [vmem:[#allocation3] sm:$0xff]  ;;  %s2396_s21 = sshll.u32 %s2993_s27, 3  ;;  %vm1062_vm4 = vcmask 64512   ;;  %v3021_v26 = vmov 0.0   ;;  %vm3022_vm5 = vmmov 0   ;;  %v1055_v27 = vld [vmem:[#allocation3 + $0x8] sm:$0xff] }
 0x33f   : > { %2516 = vmatprep.subr.mxu0 %v3021_v26  ;;  %2518 = vmatprep.mubr.msk.f32.mxu0 %vm3022_vm5, %v3021_v26  ;;  %s1049_s19 = scalar_lea.vmem [#allocation2], %s2396_s21  ;;  %v1057_v29 = vld [vmem:[#allocation3 + $0x18] sm:$0xff]  ;;  %v1056_v32 = vld [vmem:[#allocation3 + $0x10] sm:$0xff]  ;;  %vm1355_vm6 = vcmask 130048   ;;  %v1058_v2 = vld [vmem:[#allocation4] sm:$0xff]  ;;  %s1047_s23 = scalar_lea.vmem %s3312_s14, %s2396_s21  ;;  %vm2016_vm7 = vcmask 261120  }
 0x340   : > { %2517 = vmatpush3.msra.mxu0 %v1054_v25  ;;  %2531 = vmatprep.subr.mxu1 %v3021_v26  ;;  %v1059_v3 = vld [vmem:[#allocation4 + $0x8] sm:$0xff]  ;;  %v1060_v10 = vld [vmem:[#allocation4 + $0x10] sm:$0xff]  ;;  %v1061_v13 = vld [vmem:[#allocation4 + $0x18] sm:$0xff]  ;;  %s3667_s22 = sld [smem:[#allocation30_spill]]  ;;  %s3668_s26 = sld [smem:[#allocation32_spill]]  ;;  %vm2153_vm8 = vcmask 523264  }
 0x341   : > { %2521 = vmatprep.subr.mxu0 %v3021_v26  ;;  %2532 = vmatpush3.msra.mxu1 %v1057_v29  ;;  %v1704_v18 = vld [vmem:[%s3613_s9] sm:$0xff]  ;;  %v2409_v19 = vld [vmem:[%s3613_s9 + $0x8] sm:$0xff]  ;;  %v2414_v20 = vld [vmem:[%s3613_s9 + $0x18] sm:$0xff]  ;;  %s3670_s14 = sld [smem:[#allocation31_spill]]  ;;  %s3671_s21 = sld [smem:[#allocation24_spill]] }
 0x342   : > { %2533 = vmatprep.mubr.msk.f32.mxu1 %vm3022_vm5, %v3021_v26  ;;  %2541 = vmatprep.subr.mxu1 %v3021_v26  ;;  %v2412_v23 = vld [vmem:[%s3613_s9 + $0x10] sm:$0xff]  ;;  %s2424_s24 = sshll.u32 %s2997_s28, 1  ;;  %s3672_s30 = sld [smem:[#allocation33_spill]] }
 0x343   : > { %s2241_s0 = sadd.s32 %s2993_s27, %s2424_s24  ;;  %s2245_s15 = sshll.u32 %s608_s18, 4  ;;  %s3548_s15 = int_to_ptr.vmem [resolvable:$true] %s2245_s15 }
 0x344   : > { %v1050_v28 = vld [vmem:[%s1049_s19] sm:$0xff]  ;;  %v1051_v30 = vld [vmem:[%s1049_s19 + $0x10] sm:$0xff]  ;;  %s2230_s27 = scalar_lea.sflag [#allocation7], %s606_s17  ;;  %s2903_s28 = scalar_lea.vmem %s3548_s15, 128 }
 0x345   : > { %2519 = vmatmul.mubr.msk.f32.vlgmr.msra.gmra.mrb[0].mxu0 %vm1062_vm4, %v1050_v28  ;;  %v1053_v31 = vld [vmem:[%s1049_s19 + $0x30] sm:$0xff]  ;;  %v1052_v33 = vld [vmem:[%s1049_s19 + $0x20] sm:$0xff]  ;;  %s3673_s19 = sld [smem:[#allocation34_spill]]  ;;  %p2904_p10 = scmp.ne.s32.totalorder %s3548_s15, %s2903_s28 }
 0x346   : > { %2522 = vmatpush3.msra.mxu0 %v1055_v27  ;;  %2523 = vmatprep.mubr.msk.f32.mxu0 %vm3022_vm5, %v3021_v26  ;;  %s3669_s12 = smov %s3668_s26  ;;  %s3024_s24 = smov [#allocation13]  }
 0x347   : > { %2526 = vmatprep.subr.mxu0 %v3021_v26  ;;  %2534 = vmatmul.mubr.msk.f32.vlgmr.msra.gmra.mrb[0].mxu1 %vm1062_vm4, %v1053_v31  ;;  %p3674_p12 = scmp.ne.s32.totalorder %s3671_s21, 0 }
 0x348   : > { %2543 = vmatprep.mubr.msk.f32.mxu1 %vm3022_vm5, %v3021_v26  ;;  %2542 = vmatpush3.xpose.msk.msra.mxu1 %vm1355_vm6, %v1059_v3  ;;  %v2138_v3 = vld [vmem:[%s3668_s26] sm:$0xff]  ;;  %s2425_s26 = sshll.u32 %s2241_s0, 7  ;;  %s2907_s0 = sshll.u32 %s3024_s24, 4  ;;  %s2908_s0 = int_to_ptr.vmem [resolvable:$false] %s2907_s0 }
 0x349   : > { %2524 = vmatmul.mubr.msk.f32.vlgmr.msra.gmra.mrb[2].mxu0 %vm1062_vm4, %v1051_v30  ;;  %2551 = vmatprep.subr.mxu1 %v3021_v26  ;;  %p2905_p1 = pnand %p2904_p10, %p3674_p12  ;;  %p2910_p5 = scmp.lt.s32.totalorder %s3548_s15, %s2908_s0 }
 0x34a   : > { %2527 = vmatpush3.msra.mxu0 %v1056_v32  ;;  %2528 = vmatprep.mubr.msk.f32.mxu0 %vm3022_vm5, %v3021_v26 }
 0x34b   : > { %2536 = vmatprep.subr.mxu0 %v3021_v26  ;;  %p2906_p4 = pneg %p2905_p1 }
 0x34d   : > { %2529 = vmatmul.mubr.msk.f32.vlgmr.msra.gmra.mrb[4].mxu0 %vm1062_vm4, %v1052_v33 }
 0x34e   : > { %2538 = vmatprep.mubr.msk.f32.mxu0 %vm3022_vm5, %v3021_v26 }
 0x351   : > { %2537 = vmatpush3.xpose.msk.msra.mxu0 %vm1355_vm6, %v1058_v2 }
 0x352   : > { %2546 = vmatprep.subr.mxu0 %v3021_v26 }
 0x418   : > { %v1132_v34 = vpop.f32.mrb[0].mxu0 }
 0x419   : > { %v2520_v35 = vpop.f32.mrb[1].mxu0  ;;  %v1356_v36 = vsel %vm1355_vm6, %v1132_v34, -inf }
 0x41a   : > { %1357 = vmax.xlane.f32.xlu0 %v1356_v36  ;;  %v1351_v38 = vpop.f32.mrb[0].mxu1 }
 0x41b   : > { %v2535_v41 = vpop.f32.mrb[1].mxu1  ;;  %v1365_v45 = vsel %vm1355_vm6, %v1351_v38, -inf }
 0x41c   : > { %v1205_v37 = vpop.f32.mrb[2].mxu0 }
 0x41d   : > { %v2525_v39 = vpop.f32.mrb[3].mxu0  ;;  %v1359_v40 = vsel %vm1355_vm6, %v1205_v37, -inf }
 0x41e   : > { %1360 = vmax.xlane.f32.xlu0 %v1359_v40  ;;  %v2416_v40 = vld [vmem:[%s3614_s10] ss:$0 sm:$0xff] }
 0x420   : > { %v1278_v42 = vpop.f32.mrb[4].mxu0 }
 0x421   : > { %v2530_v43 = vpop.f32.mrb[5].mxu0  ;;  %v1362_v44 = vsel %vm1355_vm6, %v1278_v42, -inf }
 0x422   : > { %1363 = vmax.xlane.f32.xlu1 %v1362_v44  ;;  %v1048_v43 = vld [vmem:[%s1047_s23] sm:$0xff] }
 0x426   : > { %1366 = vmax.xlane.f32.xlu1 %v1365_v45 }
 0x4a7   : > { %v1358_v46 = vpop.xlane.xlu0 %1357 }
 0x4a8   : > { %v1368_v47 = vsub.f32 %v1132_v34, %v1358_v46 }
 0x4aa   : > { %v1372_v48 = vmul.f32 1.442695, %v1368_v47 }
 0x4ab   : > { %v1361_v49 = vpop.xlane.xlu0 %1360 }
 0x4ac   : > { %2771 = vpow2.f32 %v1372_v48  ;;  %v1369_v50 = vsub.f32 %v1205_v37, %v1361_v49 }
 0x4ae   : > { %v1374_v51 = vmul.f32 1.442695, %v1369_v50 }
 0x4af   : > { %v1364_v52 = vpop.xlane.xlu1 %1363 }
 0x4b0   : > { %2773 = vpow2.f32 %v1374_v51  ;;  %v1370_v53 = vsub.f32 %v1278_v42, %v1364_v52  ;;  %v2045_v51 = vld [vmem:[#allocation11] sm:$0xff]  ;;  %v2046_v52 = vld [vmem:[#allocation11 + $0x8] sm:$0xff] }
 0x4b2   : > { %v1376_v54 = vmul.f32 1.442695, %v1370_v53  ;;  %v2627_v53 = vpack.c.bf16 %v2046_v52, %v2045_v51 }
 0x4b3   : > { %v1367_v55 = vpop.xlane.xlu1 %1366 }
 0x4b4   : > { %2775 = vpow2.f32 %v1376_v54  ;;  %v1371_v56 = vsub.f32 %v1351_v38, %v1367_v55  ;;  %v3023_v54 = vmov 0.0|0.0   ;;  %v2047_v55 = vld [vmem:[#allocation11 + $0x10] sm:$0xff] }
 0x4b6   : > { %v2772_v57 = vpop.eup %2771  ;;  %v1378_v58 = vmul.f32 1.442695, %v1371_v56  ;;  %v2048_v56 = vld [vmem:[#allocation11 + $0x18] sm:$0xff] }
 0x4b7   : > { %v1380_v59 = vsel %vm1355_vm6, %v2772_v57, 0.0 }
 0x4b8   : > { %2777 = vpow2.f32 %v1378_v58  ;;  %1381 = vadd.xlane.f32.xlu0 %v1380_v59 }
 0x4ba   : > { %v2774_v60 = vpop.eup %2773 }
 0x4bb   : > { %v1383_v61 = vsel %vm1355_vm6, %v2774_v60, 0.0 }
 0x4bc   : > { %1384 = vadd.xlane.f32.xlu1 %v1383_v61 }
 0x4be   : > { %v2776_v62 = vpop.eup %2775 }
 0x4bf   : > { %v1386_v63 = vsel %vm1355_vm6, %v2776_v62, 0.0 }
 0x4c0   : > { %1387 = vadd.xlane.f32.xlu0 %v1386_v63 }
 0x4c2   : > { %v2778_v0 = vpop.eup %2777 }
 0x4c3   : > { %v1389_v1 = vsel %vm1355_vm6, %v2778_v0, 0.0 }
 0x4c4   : > { %1390 = vadd.xlane.f32.xlu1 %v1389_v1 }
 0x545   : > { %v1382_v4 = vpop.xlane.xlu0 %1381 }
 0x546   : > { %2779 = vrcp.f32 %v1382_v4  ;;  %v2139_v4 = vld [vmem:[%s3669_s12 + $0x8] sm:$0xff] }
 0x549   : > { %v1385_v5 = vpop.xlane.xlu1 %1384 }
 0x54a   : > { %2781 = vrcp.f32 %v1385_v5  ;;  %v2633_v5 = vpack.c.bf16 %v2139_v4, %v2138_v3 }
 0x54d   : > { %v1388_v6 = vpop.xlane.xlu0 %1387 }
 0x54e   : > { %2783 = vrcp.f32 %v1388_v6  ;;  %v2140_v6 = vld [vmem:[%s3669_s12 + $0x10] sm:$0xff] }
 0x550   : > { %v2780_v7 = vpop.eup %2779 }
 0x551   : > { %v1396_v8 = vmul.f32 %v2780_v7, %v2772_v57  ;;  %v1391_v9 = vpop.xlane.xlu1 %1390  ;;  %v2630_v57 = vpack.c.bf16 %v2048_v56, %v2047_v55  ;;  %v2141_v7 = vld [vmem:[%s3669_s12 + $0x18] sm:$0xff] }
 0x552   : > { %2785 = vrcp.f32 %v1391_v9  ;;  %v2142_v9 = vld [vmem:[%s3669_s12 + $0x20] sm:$0xff] }
 0x553   : > { %2539 = vmatmul.mubr.msk.f32.vlgmr.msra.gmra.mrb[6].mxu0 %vm1355_vm6, %v1396_v8  ;;  %v2636_v8 = vpack.c.bf16 %v2141_v7, %v2140_v6 }
 0x554   : > { %v2782_v11 = vpop.eup %2781  ;;  %2547 = vmatpush3.xpose.msk.msra.mxu0 %vm1355_vm6, %v1060_v10  ;;  %2548 = vmatprep.mubr.msk.f32.mxu0 %vm3022_vm5, %v3021_v26  ;;  %v2143_v10 = vld [vmem:[%s3669_s12 + $0x28] sm:$0xff] }
 0x555   : > { %v1397_v12 = vmul.f32 %v2782_v11, %v2774_v60  ;;  %2556 = vmatprep.subr.mxu0 %v3021_v26  ;;  %v2639_v11 = vpack.c.bf16 %v2143_v10, %v2142_v9 }
 0x557   : > { %2544 = vmatmul.mubr.msk.f32.vlgmr.msra.gmra.mrb[2].mxu1 %vm1355_vm6, %v1397_v12  ;;  %v2144_v12 = vld [vmem:[%s3669_s12 + $0x30] sm:$0xff] }
 0x558   : > { %v2784_v14 = vpop.eup %2783  ;;  %2552 = vmatpush3.xpose.msk.msra.mxu1 %vm1355_vm6, %v1061_v13  ;;  %2553 = vmatprep.mubr.msk.f32.mxu1 %vm3022_vm5, %v3021_v26  ;;  %v2145_v13 = vld [vmem:[%s3669_s12 + $0x38] sm:$0xff] }
 0x559   : > { %v1398_v15 = vmul.f32 %v2784_v14, %v2776_v62  ;;  %2561 = vmatprep.subr.mxu1 %v3021_v26  ;;  %v2417_v62 = vld [vmem:[%s3615_s11] ss:$0 sm:$0xff]  ;;  %v2642_v14 = vpack.c.bf16 %v2145_v13, %v2144_v12 }
 0x55b   : > { %2549 = vmatmul.mubr.msk.f32.vlgmr.msra.gmra.mrb[8].mxu0 %vm1355_vm6, %v1398_v15  ;;  %v2419_v15 = vld [vmem:[%s3670_s14] ss:$0 sm:$0xff]  ;;  %s3546_s14 = scalar_lea.hbm %s3673_s19, %s2425_s26 }
 0x55c   : > { %v2786_v16 = vpop.eup %2785  ;;  %2558 = vmatprep.mubr.msk.f32.mxu0 %vm3022_vm5, %v3021_v26  ;;  %2557 = vmatpush3.msra.mxu0 %v2409_v19 }
 0x55d   : > { %v1399_v17 = vmul.f32 %v2786_v16, %v2778_v0  ;;  %2566 = vmatprep.subr.mxu0 %v3021_v26  ;;  %v2418_v0 = vld [vmem:[%s3667_s22] ss:$0 sm:$0xff]  ;;  %s2909_s22 = scalar_lea.vmem %s2908_s0, 256 }
 0x55e   : > { %p2911_p6 = scmp.lt.s32.totalorder %s2909_s22, %s2903_s28 }
 0x55f   : > { %2554 = vmatmul.mubr.msk.f32.vlgmr.msra.gmra.mrb[4].mxu1 %vm1355_vm6, %v1399_v17 }
 0x560   : > { %2563 = vmatprep.mubr.msk.f32.mxu1 %vm3022_vm5, %v3021_v26  ;;  %2562 = vmatpush3.msra.mxu1 %v1704_v18  ;;  %p2912_p7 = por %p2911_p6, %p2910_p5 }
 0x561   : > { %2571 = vmatprep.subr.mxu1 %v3021_v26 }
 0x562   : > { %p2913_p9 = pnand %p2912_p7, %p2906_p4 }
 0x626   : > { %v1472_v21 = vpop.f32.mrb[6].mxu0 }
 0x627   : > { %v2540_v22 = vpop.f32.mrb[7].mxu0  ;;  %2564 = vmatmul.mubr.msk.f32.vlgmr.msra.gmra.mrb[6].mxu1 %vm1062_vm4, %v1472_v21 }
 0x628   : > { %2572 = vmatpush3.msra.mxu1 %v2414_v20  ;;  %2573 = vmatprep.mubr.msk.f32.mxu1 %vm3022_vm5, %v3021_v26 }
 0x629   : > { %2632 = vmatprep.subr.bf16.mxu1 %v3023_v54 }
 0x62a   : > { %v1548_v24 = vpop.f32.mrb[2].mxu1 }
 0x62b   : > { %v2545_v25 = vpop.f32.mrb[3].mxu1  ;;  %2559 = vmatmul.mubr.msk.f32.vlgmr.msra.gmra.mrb[10].mxu0 %vm1062_vm4, %v1548_v24 }
 0x62c   : > { %2567 = vmatpush3.msra.mxu0 %v2412_v23  ;;  %2568 = vmatprep.mubr.msk.f32.mxu0 %vm3022_vm5, %v3021_v26 }
 0x62d   : > { %2626 = vmatprep.subr.bf16.mxu0 %v3023_v54 }
 0x62e   : > { %v1624_v27 = vpop.f32.mrb[8].mxu0 }
 0x62f   : > { %v2550_v28 = vpop.f32.mrb[9].mxu0  ;;  %2569 = vmatmul.mubr.msk.f32.vlgmr.msra.gmra.mrb[12].mxu0 %vm1062_vm4, %v1624_v27 }
 0x630   : > { %2584 = vmatprep.mubr.msk.f32.mxu0 %vm3022_vm5, %v3021_v26  ;;  %2628 = vmatpush3.bf16.msra.mxu0 %v2627_v53 }
 0x631   : > { %2629 = vmatprep.subr.bf16.mxu0 %v3023_v54 }
 0x632   : > { %v1700_v29 = vpop.f32.mrb[4].mxu1 }
 0x633   : > { %v2555_v30 = vpop.f32.mrb[5].mxu1  ;;  %2574 = vmatmul.mubr.msk.f32.vlgmr.msra.gmra.mrb[8].mxu1 %vm1062_vm4, %v1700_v29  ;;  %v2421_v29 = vld [vmem:[%s3672_s30] ss:$0 sm:$0xff] }
 0x634   : > { %2603 = vmatprep.mubr.msk.f32.mxu1 %vm3022_vm5, %v3021_v26  ;;  %2631 = vmatpush3.bf16.msra.mxu0 %v2630_v57 }
 0x635   : > { %2634 = vmatpush3.bf16.msra.mxu1 %v2633_v5 }
 0x636   : > { %2635 = vmatprep.subr.bf16.mxu1 %v3023_v54 }
 0x639   : > { %2637 = vmatpush3.bf16.msra.mxu1 %v2636_v8 }
 0x63a   : > { %2638 = vmatprep.subr.bf16.mxu1 %v3023_v54 }
 0x63d   : > { %2640 = vmatpush3.bf16.msra.mxu1 %v2639_v11 }
 0x63e   : > { %2641 = vmatprep.subr.bf16.mxu1 %v3023_v54 }
 0x641   : > { %2643 = vmatpush3.bf16.msra.mxu1 %v2642_v14 }
 0x6fa   : > { %v1849_v31 = vpop.f32.mrb[6].mxu1 }
 0x6fb   : > { %v2565_v32 = vpop.f32.mrb[7].mxu1 }
 0x6fe   : > { %v1776_v33 = vpop.f32.mrb[10].mxu0 }
 0x6ff   : > { %v1850_v34 = vadd.f32 %v1849_v31, %v1776_v33  ;;  %v2560_v35 = vpop.f32.mrb[11].mxu0 }
 0x702   : > { %v1924_v36 = vpop.f32.mrb[12].mxu0 }
 0x703   : > { %v1928_v37 = vadd.f32 %v1924_v36, %v1850_v34  ;;  %v2570_v38 = vpop.f32.mrb[13].mxu0 }
 0x706   : > { %v2000_v39 = vpop.f32.mrb[8].mxu1 }
 0x707   : > { %v2004_v41 = vadd.f32 %v2000_v39, %v1928_v37  ;;  %v2575_v42 = vpop.f32.mrb[9].mxu1 }
 0x709   : > { %v2012_v44 = vadd.f32 %v2416_v40, %v2004_v41 }
 0x70b   : > { %v3495_v26 = vadd.f32 %v2012_v44, %v1048_v43 }
 0x70d   : > { %v2017_v45 = vsel %vm2016_vm7, %v3495_v26, 0.0 }
 0x70e   : > { %2018 = vadd.xlane.f32.xlu0 %v2017_v45 }
 0x79b   : > { %v2019_v46 = vpop.xlane.xlu0 %2018 }
 0x79c   : > { %v2021_v47 = vmul.f32 0.03125, %v2019_v46 }
 0x79e   : > { %v2022_v48 = vsub.f32 %v3495_v26, %v2021_v47 }
 0x7a0   : > { %v2023_v49 = vmul.f32 %v2022_v48, %v2022_v48 }
 0x7a2   : > { %v2024_v50 = vsel %vm2016_vm7, %v2023_v49, 0.0 }
 0x7a3   : > { %2025 = vadd.xlane.f32.xlu1 %v2024_v50 }
 0x830   : > { %v2026_v58 = vpop.xlane.xlu1 %2025 }
 0x831   : > { %v2027_v59 = vmul.f32 0.03125, %v2026_v58 }
 0x833   : > { %v2028_v60 = vadd.f32 1e-05, %v2027_v59 }
 0x835   : > { %2787 = vrsqrt.f32 %v2028_v60 }
 0x83f   : > { %v2788_v61 = vpop.eup %2787 }
 0x840   : > { %v2030_v63 = vmul.f32 %v2788_v61, %v2022_v48 }
 0x842   : > { %v2037_v1 = vmul.f32 %v2417_v62, %v2030_v63 }
 0x844   : > { %v2044_v2 = vadd.f32 %v2418_v0, %v2037_v1 }
 0x846   : > { %2585 = vmatmul.mubr.msk.f32.vlgmr.msra.gmra.mrb[14].mxu0 %vm2016_vm7, %v2044_v2 }
 0x919   : > { %v2125_v16 = vpop.f32.mrb[14].mxu0 }
 0x91a   : > { %v2126_v17 = vadd.f32 %v2419_v15, %v2125_v16  ;;  %v2586_v18 = vpop.f32.mrb[15].mxu0 }
 0x91c   : > { %v2130_v19 = vmul.f32 %v2126_v17, %v2126_v17  ;;  %v2129_v25 = vmul.f32 0.5, %v2126_v17 }
 0x91e   : > { %v2131_v20 = vmul.f32 %v2130_v19, %v2126_v17 }
 0x920   : > { %v2132_v21 = vmul.f32 0.044715, %v2131_v20 }
 0x922   : > { %v2133_v22 = vadd.f32 %v2132_v21, %v2126_v17 }
 0x924   : > { %v2134_v23 = vmul.f32 0.7978846, %v2133_v22 }
 0x926   : > { %2789 = vtanh.f32 %v2134_v23 }
 0x930   : > { %v2790_v24 = vpop.eup %2789 }
 0x931   : > { %v2136_v27 = vadd.f32 1.0, %v2790_v24 }
 0x933   : > { %v2137_v28 = vmul.f32 %v2136_v27, %v2129_v25 }
 0x935   : > { %2604 = vmatmul.mubr.msk.f32.vlgmr.msra.gmra.mrb[10].mxu1 %vm2153_vm8, %v2137_v28 }
 0xa08   : > { %v2223_v30 = vpop.f32.mrb[10].mxu1 }
 0xa09   : > { %v2224_v31 = vadd.f32 %v2421_v29, %v2223_v30  ;;  %v2605_v32 = vpop.f32.mrb[11].mxu1 }
 0xa0b   : > { %v2227_v33 = vadd.f32 %v2224_v31, %v3495_v26 }
 0xa0d   : > { %2228 = vst.msk [vmem:[%s608_s18] sm:$0xff] %vm2016_vm7, %v2227_v33 }
 0xa0e   : > { %2916 = shalt.err (!%p2913_p9)
}
 0xa0f   : > { %s2917_s17 = scalar_lea.hbm %s3546_s14, 128  ;;  %s2921_s29 = scalar_lea.hbm %s3673_s19, 512 }
 0xa10   : > { %p2918_p11 = scmp.ne.s32.totalorder %s3546_s14, %s2917_s17  ;;  %p2922_p8 = scmp.lt.u32.totalorder %s3546_s14, %s3673_s19 }
 0xa11   : > { %p2923_p0 = scmp.lt.u32.totalorder %s2921_s29, %s2917_s17  ;;  %p2925_p10 = scmp.lt.u32.totalorder %s2917_s17, %s3546_s14 }
 0xa12   : > { %p2919_p13 = pnand %p2918_p11, %p3674_p12 }
 0xa13   : > { %p2924_p2 = por %p2923_p0, %p2922_p8 }
 0xa14   : > { %p2920_p3 = pneg %p2919_p13 }
 0xa15   : > { %p2926_p1 = por %p2925_p10, %p2924_p2 }
 0xa17   : > { %p2927_p4 = pnand %p2926_p1, %p2920_p3 }
 0xa19   : > { %2930 = shalt.err (!%p2927_p4)
}
 0xa1a   : > { %2660 = dma.vmem_to_hbm [thread:$0]  (%p3674_p12), %s3548_s15, 128, %s3546_s14, %s2230_s27  }
 0xa1b PF: > { %s3675_s23 = sld [smem:[#allocation22_spill]]  ;;  %s3676_s16 = sld [smem:[#allocation18_spill]] }
 0xa1c   : > { %s3677_s28 = sld [smem:[#allocation26_spill]] }
 0xa21   : > { %p2687_p5 = scmp.ge.s32.totalorder %s3675_s23, 2  ;;  %s2257_s24 = sand.u32 1, %s3676_s16  }
 0xa22   : > { %p3678_p6 = scmp.ne.s32.totalorder %s3677_s28, 0  ;;  %s2258_s0 = scalar_lea.sflag [#allocation7], %s2257_s24 }
 0xa24   : > { %p2676_p7 = pnand %p2687_p5, %p3678_p6 }
 0xa26   : > { %2976 = dma.done.wait (!%p2676_p7), %s2258_s0, 128  }
 0xa27   : > { %2978 = vsyncadd (!%p2676_p7), %s2258_s0, 4294967168  ;;  %s33_s30 = sadd.s32 1, %s3675_s23   ;;  %s3679_s22 = sld [smem:[#allocation19_spill]] }
 0xa28   : > { %p30_p9 = scmp.ge.s32.totalorder %s33_s30, 6   ;;  %s3680_s26 = sld [smem:[#allocation27_spill]] }
 0xa29   : > { %s3681_s27 = sld [smem:[#allocation20_spill]]  ;;  %s3682_s28 = sld [smem:[#allocation21_spill]] }
 0xa2a   : > { %s3683_s29 = sld [smem:[#allocation23_spill]]  ;;  %s3684_s0 = sld [smem:[#allocation25_spill]] }
 0xa2b   : > { %s3685_s24 = smov %s2985_s25  ;;  %32 = sbr.rel (!%p30_p9) target bundleno = 16 (0x10), region = 149 }
 0xa2d   : > { %s3686_s25 = smov %s3679_s22 }
 0xa32   :  { %2263 = vsyncpa [#allocation6], 1 }
 0xa33   :  { %2265 = vsyncpa [#allocation6 + $0x1], 1 }
 0xa34   :  { %2266 = vsyncpa [#allocation9], 1 }
 0xa35   :  { %2267 = vsyncpa [#allocation12], 1 }
 0xa36   :  { %2268 = vsyncpa [#allocation7], 1 }
 0xa37   :  { %2270 = vsyncpa [#allocation7 + $0x1], 1 }

</bundles_post_ra>
